<compile_context>
chip_gen: v7x
topology: tpu7x:2x2x1
jax: 0.10.0
libtpu: 0.0.40
codegen_flags: <defaults>
</compile_context>

<pallas_src>
import math
from functools import partial

import jax
import jax.numpy as jnp
import numpy as np
from jax.experimental import pallas as pl
from jax.experimental.pallas import tpu as pltpu


# ----------------------------- JAX glue ------------------------------------
def _unfold(x, p):
    """(B, C, H, W) -> (B, N, C*p*p); matches F.unfold(x, p, stride=p).transpose(1, 2)."""
    B, C, H, W = x.shape
    x = x.reshape(B, C, H // p, p, W // p, p)
    x = x.transpose(0, 2, 4, 1, 3, 5)            # (B, H/p, W/p, C, p, p)
    return x.reshape(B, (H // p) * (W // p), C * p * p)


def _fold(x, p, C, H, W):
    """Inverse of _unfold (non-overlapping patches); matches F.fold."""
    B = x.shape[0]
    x = x.reshape(B, H // p, W // p, C, p, p)
    x = x.transpose(0, 3, 1, 4, 2, 5)            # (B, C, H/p, p, W/p, p)
    return x.reshape(B, C, H, W)


def _sinusoid_pos(n, d):
    """Matches the PyTorch Position module."""
    pos = jnp.arange(n, dtype=jnp.float32)[:, None]            # (n, 1)
    two_i = jnp.arange(0, d, 2, dtype=jnp.float32)             # (d/2,)
    div = 10000.0 ** (two_i / d)
    pe = jnp.zeros((n, d), jnp.float32)
    pe = pe.at[:, 0::2].set(jnp.sin(pos / div))
    pe = pe.at[:, 1::2].set(jnp.cos(pos / div))
    return pe


# ----------------------------- Pallas kernel --------------------------------
def _mha_kernel(x_ref, add_ref, wqkv_ref, mattn_ref, mcol_ref, wo_ref,
                bo_ref, g_ref, beta_ref, out_ref, *, Bt, N, heads, D, eps):
    DP = x_ref.shape[-1]                           # lane-padded feature width (128)
    R = Bt * N
    x = x_ref[...].reshape(R, DP)                  # (R, DP) f32, padded patches == res_q

    # ---- one fused QKV projection (bf16 operands, f32 accumulation) ----
    qkv = jnp.dot(x.astype(jnp.bfloat16), wqkv_ref[...],
                  preferred_element_type=jnp.float32)           # (R, 3*DP)

    mcol = mcol_ref[...]                           # (heads*N, DP) 0/1 head-column mask

    outs = []
    for b in range(Bt):                            # static; Bt is small (1 for B=2)
        lo = b * N
        # pos / bias / scale are folded into `add` (scale also folded into Wq cols)
        q = qkv[lo:lo + N, 0:DP] + add_ref[:, 0:DP]                     # (N, DP)
        k = qkv[lo:lo + N, DP:2 * DP] + add_ref[:, DP:2 * DP]           # (N, DP)

        # ---- scores for all heads in ONE matmul: K tiled on sublanes + masked ----
        k_bd = (jnp.concatenate([k] * heads, axis=0) * mcol).astype(jnp.bfloat16)
        s = jax.lax.dot_general(q.astype(jnp.bfloat16), k_bd,
                                (((1,), (1,)), ((), ())),
                                preferred_element_type=jnp.float32)      # (N, heads*N)

        # ---- one lane-dense softmax over (heads*N, heads*N) with block-diag mask ----
        s = jnp.concatenate([s] * heads, axis=0) + mattn_ref[...]        # (HN, HN)
        s = s - jnp.max(s, axis=-1, keepdims=True)
        e = jnp.exp(s)                                                   # masked -> 0.0
        p_ = (e * pl.reciprocal(jnp.sum(e, axis=-1, keepdims=True),
                                approx=True)).astype(jnp.bfloat16)       # (HN, HN)

        # ---- P @ V for all heads in ONE matmul; mask + row-block sum -> (N, DP) ----
        v = qkv[lo:lo + N, 2 * DP:3 * DP] + add_ref[:, 2 * DP:3 * DP]    # (N, DP)
        v_t = jnp.concatenate([v] * heads, axis=0).astype(jnp.bfloat16)  # (HN, DP)
        o_st = jnp.dot(p_, v_t, preferred_element_type=jnp.float32) * mcol  # (HN, DP)
        o = o_st[0:N]
        for h in range(1, heads):                  # sublane-aligned slices, cheap adds
            o = o + o_st[h * N:(h + 1) * N]
        outs.append(o)                             # (N, DP) concatenated head outputs

    attn = outs[0] if Bt == 1 else jnp.concatenate(outs, axis=0)         # (R, DP)

    # ---- fused output projection + residual + LayerNorm (raw moments, /D) ----
    y = jnp.dot(attn.astype(jnp.bfloat16), wo_ref[...],
                preferred_element_type=jnp.float32) + bo_ref[...] + x    # pad cols == 0
    mu = jnp.sum(y, axis=-1, keepdims=True) * (1.0 / D)
    var = jnp.sum(y * y, axis=-1, keepdims=True) * (1.0 / D) - mu * mu
    yn = (y - mu) * jax.lax.rsqrt(var + eps)
    # gamma pad = 0, beta pad = 0  ->  padded output columns stay exactly zero
    out_ref[...] = (yn * g_ref[...] + beta_ref[...]).reshape(Bt, N, DP)


# ----------------------------- hoisted parameter prep -----------------------
def prepare_mha_params(params, *, dim, heads, patch_kernel, n_patches):
    """All parameter preprocessing (done once, off the hot path)."""
    C, p = dim, patch_kernel
    D = C * p * p
    dh = D // heads
    assert heads * dh == D, "inner_dim must be divisible by heads"
    N = n_patches
    HN = heads * N
    DP = max(128, ((D + 127) // 128) * 128)        # lane-padded width
    scale = dh ** -0.5

    def conv_as_mat(w):                            # (D, C, p, p) -> (D_in, D_out)
        return w.reshape(D, D).T.astype(jnp.float32)

    def padmat(m):                                 # (D, D) -> (DP, DP)
        return jnp.pad(m, ((0, DP - D), (0, DP - D)))

    def padrows(m):                                # (N, D) -> (N, DP)
        return jnp.pad(m, ((0, 0), (0, DP - D)))

    def padvec(v):                                 # (D,) -> (1, DP)
        return jnp.pad(v.astype(jnp.float32), (0, DP - D)).reshape(1, DP)

    # Fused, padded QKV weight; attention scale folded into the q columns.
    wqkv = jnp.concatenate([padmat(conv_as_mat(params["wq"]) * scale),
                            padmat(conv_as_mat(params["wk"])),
                            padmat(conv_as_mat(params["wv"]))],
                           axis=1).astype(jnp.bfloat16)                   # (DP, 3*DP)

    # Conv biases + sinusoidal pos-enc (+ scale for q) folded into one additive term.
    pos = _sinusoid_pos(N, D)
    add = jnp.concatenate([
        padrows((pos + params["bq"][None, :]) * scale),
        padrows(pos + params["bk"][None, :]),
        padrows(jnp.broadcast_to(params["bv"][None, :], (N, D))),
    ], axis=1).astype(jnp.float32)                                        # (N, 3*DP)

    # Block-diagonal additive score mask (finite -1e30, not -inf) and the
    # per-head column mask used to build K_blockdiag and to collapse P@V.
    r = jnp.arange(HN)
    row_head = r[:, None] // N
    mask_attn = jnp.where(row_head == (r[None, :] // N),
                          0.0, -1e30).astype(jnp.float32)                 # (HN, HN)
    c = jnp.arange(DP)
    mask_col = (row_head == (c[None, :] // dh)).astype(jnp.float32)       # (HN, DP)

    wo = jnp.pad(params["wo"].T.astype(jnp.float32),
                 ((0, DP - D), (0, DP - D))).astype(jnp.bfloat16)          # (DP, DP)

    return {
        "wqkv": wqkv, "add": add, "mask_attn": mask_attn, "mask_col": mask_col,
        "wo": wo, "bo": padvec(params["bo"]),
        "gamma": padvec(params["gamma"]), "beta": padvec(params["beta"]),
    }


# ----------------------------- forward wrapper -------------------------------
def mha_forward(query, prep, *, heads=8, patch_kernel=3, eps=1e-5, grid_steps=None):
    B, C, H, W = query.shape
    p = patch_kernel
    D = C * p * p
    N = (H // p) * (W // p)
    HN = heads * N
    DP = prep["wo"].shape[0]

    # Keep 2 "parallel" grid steps when possible (both v7x TensorCores busy),
    # packing B//2 batch elements per step; single step otherwise.
    if grid_steps is None:
        grid_steps = 2 if (B > 1 and B % 2 == 0) else 1
    assert B % grid_steps == 0
    Bt = B // grid_steps

    patches = _unfold(query, p).astype(jnp.float32)                  # (B, N, D) == res_q
    patches = jnp.pad(patches, ((0, 0), (0, 0), (0, DP - D)))        # lane-dense input

    kernel = partial(_mha_kernel, Bt=Bt, N=N, heads=heads, D=D, eps=eps)

    out = pl.pallas_call(
        kernel,
        out_shape=jax.ShapeDtypeStruct((B, N, DP), jnp.float32),
        grid=(grid_steps,),
        in_specs=[
            pl.BlockSpec((Bt, N, DP), lambda b: (b, 0, 0)),   # padded patches / res_q
            pl.BlockSpec((N, 3 * DP), lambda b: (0, 0)),      # folded pos + biases
            pl.BlockSpec((DP, 3 * DP), lambda b: (0, 0)),     # fused Wq|Wk|Wv (bf16)
            pl.BlockSpec((HN, HN), lambda b: (0, 0)),         # block-diag additive mask
            pl.BlockSpec((HN, DP), lambda b: (0, 0)),         # per-head column mask
            pl.BlockSpec((DP, DP), lambda b: (0, 0)),         # Wo (bf16, padded)
            pl.BlockSpec((1, DP), lambda b: (0, 0)),          # bo
            pl.BlockSpec((1, DP), lambda b: (0, 0)),          # gamma (pad = 0)
            pl.BlockSpec((1, DP), lambda b: (0, 0)),          # beta  (pad = 0)
        ],
        out_specs=pl.BlockSpec((Bt, N, DP), lambda b: (b, 0, 0)),
        compiler_params=pltpu.CompilerParams(dimension_semantics=("parallel",)),
    )(patches, prep["add"], prep["wqkv"], prep["mask_attn"], prep["mask_col"],
      prep["wo"], prep["bo"], prep["gamma"], prep["beta"])

    return _fold(out[:, :, :D], p, C, H, W)                           # strip lane pad


def multi_head_attention(query, params, *, heads=8, patch_kernel=3, eps=1e-5):
    """Convenience one-shot wrapper (prepare + forward)."""
    _, C, H, W = query.shape
    p = patch_kernel
    prep = prepare_mha_params(params, dim=C, heads=heads, patch_kernel=p,
                              n_patches=(H // p) * (W // p))
    return mha_forward(query, prep, heads=heads, patch_kernel=p, eps=eps)


# ----------------------------- pure-JAX reference ----------------------------
def reference_forward(query, params, *, heads=8, patch_kernel=3, eps=1e-5):
    B, C, H, W = query.shape
    p = patch_kernel
    D = C * p * p
    dh = D // heads
    scale = dh ** -0.5

    def conv(x, w, b):
        y = jax.lax.conv_general_dilated(
            x, w, window_strides=(p, p), padding="VALID",
            dimension_numbers=("NCHW", "OIHW", "NCHW"))
        return y + b[None, :, None, None]

    q_ = conv(query, params["wq"], params["bq"]).reshape(B, D, -1).transpose(0, 2, 1)
    k_ = conv(query, params["wk"], params["bk"]).reshape(B, D, -1).transpose(0, 2, 1)
    v_ = conv(query, params["wv"], params["bv"]).reshape(B, D, -1).transpose(0, 2, 1)
    N = q_.shape[1]
    pos = _sinusoid_pos(N, D)[None]
    q_ = q_ + pos
    k_ = k_ + pos
    q = q_.reshape(B, N, heads, dh).transpose(0, 2, 1, 3)
    k = k_.reshape(B, N, heads, dh).transpose(0, 2, 1, 3)
    v = v_.reshape(B, N, heads, dh).transpose(0, 2, 1, 3)
    dots = jnp.einsum("bhnd,bhmd->bhnm", q, k) * scale
    attn = jax.nn.softmax(dots, axis=-1)
    out = jnp.einsum("bhnm,bhmd->bhnd", attn, v)
    out = out.transpose(0, 2, 1, 3).reshape(B, N, D)
    out = out @ params["wo"].T + params["bo"]
    res_q = _unfold(query, p)
    y = out + res_q
    mu = y.mean(-1, keepdims=True)
    var = ((y - mu) ** 2).mean(-1, keepdims=True)
    y = (y - mu) / jnp.sqrt(var + eps)
    y = y * params["gamma"] + params["beta"]
    return _fold(y, p, C, H, W)


# ----------------------------- main ------------------------------------------
if __name__ == "__main__":
    B, C, H, W = 2, 8, 12, 12          # dim=8 channels, 12x12 spatial
    heads, p = 8, 3                    # module defaults; inner_dim = 72, dim_head = 9
    D = C * p * p

    key = jax.random.PRNGKey(0)
    ks = jax.random.split(key, 11)
    fan = C * p * p
    params = {
        "wq": jax.random.normal(ks[0], (D, C, p, p), jnp.float32) / math.sqrt(fan),
        "bq": jax.random.normal(ks[1], (D,), jnp.float32) * 0.02,
        "wk": jax.random.normal(ks[2], (D, C, p, p), jnp.float32) / math.sqrt(fan),
        "bk": jax.random.normal(ks[3], (D,), jnp.float32) * 0.02,
        "wv": jax.random.normal(ks[4], (D, C, p, p), jnp.float32) / math.sqrt(fan),
        "bv": jax.random.normal(ks[5], (D,), jnp.float32) * 0.02,
        "wo": jax.random.normal(ks[6], (D, D), jnp.float32) / math.sqrt(D),
        "bo": jax.random.normal(ks[7], (D,), jnp.float32) * 0.02,
        "gamma": 1.0 + 0.1 * jax.random.normal(ks[8], (D,), jnp.float32),
        "beta": 0.1 * jax.random.normal(ks[9], (D,), jnp.float32),
    }
    query = jax.random.normal(ks[10], (B, C, H, W), jnp.float32)

    # Hoisted parameter preprocessing (done once, off the hot path).
    prep = prepare_mha_params(params, dim=C, heads=heads, patch_kernel=p,
                              n_patches=(H // p) * (W // p))

    out = mha_forward(query, prep, heads=heads, patch_kernel=p)
    out = jax.block_until_ready(out)

    ref = reference_forward(query, params, heads=heads, patch_kernel=p)
    assert out.shape == (B, C, H, W)
    assert bool(jnp.all(jnp.isfinite(out)))
    # bf16 matmul operands (f32 accumulation) + approx reciprocal vs a pure-f32 reference.
    np.testing.assert_allclose(np.asarray(out), np.asarray(ref), atol=5e-2, rtol=2e-2)
    print("KERNEL_OK")
</pallas_src>

<mosaic_0001>
module attributes {stable_mosaic.version = 11 : i64} {
  func.func @_mha_kernel(%arg0: i32, %arg1: memref<1x16x128xf32, #tpu.memory_space<vmem>>, %arg2: memref<16x384xf32, #tpu.memory_space<vmem>>, %arg3: memref<128x384xbf16, #tpu.memory_space<vmem>>, %arg4: memref<128x128xf32, #tpu.memory_space<vmem>>, %arg5: memref<128x128xf32, #tpu.memory_space<vmem>>, %arg6: memref<128x128xbf16, #tpu.memory_space<vmem>>, %arg7: memref<1x128xf32, #tpu.memory_space<vmem>>, %arg8: memref<1x128xf32, #tpu.memory_space<vmem>>, %arg9: memref<1x128xf32, #tpu.memory_space<vmem>>, %arg10: memref<1x16x128xf32, #tpu.memory_space<vmem>>) attributes {dimension_semantics = [#tpu.dimension_semantics<parallel>], iteration_bounds = array<i64: 2>, scalar_prefetch = 0 : i64, scratch_operands = 0 : i64, tpu.core_type = #tpu.core_type<tc>, window_params = [{transform_indices = @transform_0, window_bounds = array<i64: 1, 16, 128>}, {pipeline_mode = #tpu.pipeline_mode<synchronous>, transform_indices = @transform_1, window_bounds = array<i64: 16, 384>}, {pipeline_mode = #tpu.pipeline_mode<synchronous>, transform_indices = @transform_2, window_bounds = array<i64: 128, 384>}, {pipeline_mode = #tpu.pipeline_mode<synchronous>, transform_indices = @transform_3, window_bounds = array<i64: 128, 128>}, {pipeline_mode = #tpu.pipeline_mode<synchronous>, transform_indices = @transform_4, window_bounds = array<i64: 128, 128>}, {pipeline_mode = #tpu.pipeline_mode<synchronous>, transform_indices = @transform_5, window_bounds = array<i64: 128, 128>}, {pipeline_mode = #tpu.pipeline_mode<synchronous>, transform_indices = @transform_6, window_bounds = array<i64: 1, 128>}, {pipeline_mode = #tpu.pipeline_mode<synchronous>, transform_indices = @transform_7, window_bounds = array<i64: 1, 128>}, {pipeline_mode = #tpu.pipeline_mode<synchronous>, transform_indices = @transform_8, window_bounds = array<i64: 1, 128>}, {transform_indices = @transform_9, window_bounds = array<i64: 1, 16, 128>}]} {
    %c0 = arith.constant 0 : index
    %c0_0 = arith.constant 0 : index
    %c0_1 = arith.constant 0 : index
    %0 = vector.load %arg1[%c0, %c0_0, %c0_1] : memref<1x16x128xf32, #tpu.memory_space<vmem>>, vector<1x16x128xf32>
    %1 = vector.shape_cast %0 : vector<1x16x128xf32> to vector<16x128xf32>
    %2 = arith.truncf %1 : vector<16x128xf32> to vector<16x128xbf16>
    %c0_2 = arith.constant 0 : index
    %c0_3 = arith.constant 0 : index
    %3 = vector.load %arg3[%c0_2, %c0_3] : memref<128x384xbf16, #tpu.memory_space<vmem>>, vector<128x384xbf16>
    %cst = arith.constant dense<0.000000e+00> : vector<16x384xf32>
    %4 = tpu.matmul %2, %3, %cst {dimension_numbers = #tpu.dot_dimension_numbers<[1], [0], [0], [1], [0, 0, 1, 1], [], []>} : vector<16x128xbf16>, vector<128x384xbf16>, vector<16x384xf32> -> vector<16x384xf32>
    %c0_4 = arith.constant 0 : index
    %c0_5 = arith.constant 0 : index
    %5 = vector.load %arg5[%c0_4, %c0_5] : memref<128x128xf32, #tpu.memory_space<vmem>>, vector<128x128xf32>
    %6 = vector.extract_strided_slice %4 {offsets = [0, 0], sizes = [16, 128], strides = [1, 1]} : vector<16x384xf32> to vector<16x128xf32>
    %c0_6 = arith.constant 0 : index
    %c0_7 = arith.constant 0 : index
    %7 = vector.load %arg2[%c0_6, %c0_7] : memref<16x384xf32, #tpu.memory_space<vmem>>, vector<16x128xf32>
    %8 = arith.addf %6, %7 : vector<16x128xf32>
    %9 = vector.extract_strided_slice %4 {offsets = [0, 128], sizes = [16, 128], strides = [1, 1]} : vector<16x384xf32> to vector<16x128xf32>
    %c0_8 = arith.constant 0 : index
    %c128 = arith.constant 128 : index
    %10 = vector.load %arg2[%c0_8, %c128] : memref<16x384xf32, #tpu.memory_space<vmem>>, vector<16x128xf32>
    %11 = arith.addf %9, %10 : vector<16x128xf32>
    %12 = tpu.concatenate %11, %11, %11, %11, %11, %11, %11, %11 in 0 : vector<16x128xf32>, vector<16x128xf32>, vector<16x128xf32>, vector<16x128xf32>, vector<16x128xf32>, vector<16x128xf32>, vector<16x128xf32>, vector<16x128xf32> -> vector<128x128xf32>
    %13 = arith.mulf %12, %5 : vector<128x128xf32>
    %14 = arith.truncf %13 : vector<128x128xf32> to vector<128x128xbf16>
    %15 = arith.truncf %8 : vector<16x128xf32> to vector<16x128xbf16>
    %cst_9 = arith.constant dense<0.000000e+00> : vector<16x128xf32>
    %16 = tpu.matmul %15, %14, %cst_9 {dimension_numbers = #tpu.dot_dimension_numbers<[1], [1], [0], [0], [0, 0, 1, 0], [], []>} : vector<16x128xbf16>, vector<128x128xbf16>, vector<16x128xf32> -> vector<16x128xf32>
    %17 = tpu.concatenate %16, %16, %16, %16, %16, %16, %16, %16 in 0 : vector<16x128xf32>, vector<16x128xf32>, vector<16x128xf32>, vector<16x128xf32>, vector<16x128xf32>, vector<16x128xf32>, vector<16x128xf32>, vector<16x128xf32> -> vector<128x128xf32>
    %c0_10 = arith.constant 0 : index
    %c0_11 = arith.constant 0 : index
    %18 = vector.load %arg4[%c0_10, %c0_11] : memref<128x128xf32, #tpu.memory_space<vmem>>, vector<128x128xf32>
    %19 = arith.addf %17, %18 : vector<128x128xf32>
    %cst_12 = arith.constant dense<0xFF800000> : vector<128xf32>
    %20 = vector.multi_reduction <maximumf>, %19, %cst_12 [1] : vector<128x128xf32> to vector<128xf32>
    %21 = vector.shape_cast %20 : vector<128xf32> to vector<128x1xf32>
    %22 = vector.broadcast %21 : vector<128x1xf32> to vector<128x128xf32>
    %23 = arith.subf %19, %22 : vector<128x128xf32>
    %24 = math.exp %23 : vector<128x128xf32>
    %cst_13 = arith.constant dense<0.000000e+00> : vector<128xf32>
    %25 = vector.multi_reduction <add>, %24, %cst_13 [1] : vector<128x128xf32> to vector<128xf32>
    %26 = vector.shape_cast %25 : vector<128xf32> to vector<128x1xf32>
    %27 = tpu.reciprocal %26 {approx = true} : vector<128x1xf32> -> vector<128x1xf32>
    %28 = vector.broadcast %27 : vector<128x1xf32> to vector<128x128xf32>
    %29 = arith.mulf %24, %28 : vector<128x128xf32>
    %30 = arith.truncf %29 : vector<128x128xf32> to vector<128x128xbf16>
    %31 = vector.extract_strided_slice %4 {offsets = [0, 256], sizes = [16, 128], strides = [1, 1]} : vector<16x384xf32> to vector<16x128xf32>
    %c0_14 = arith.constant 0 : index
    %c256 = arith.constant 256 : index
    %32 = vector.load %arg2[%c0_14, %c256] : memref<16x384xf32, #tpu.memory_space<vmem>>, vector<16x128xf32>
    %33 = arith.addf %31, %32 : vector<16x128xf32>
    %34 = tpu.concatenate %33, %33, %33, %33, %33, %33, %33, %33 in 0 : vector<16x128xf32>, vector<16x128xf32>, vector<16x128xf32>, vector<16x128xf32>, vector<16x128xf32>, vector<16x128xf32>, vector<16x128xf32>, vector<16x128xf32> -> vector<128x128xf32>
    %35 = arith.truncf %34 : vector<128x128xf32> to vector<128x128xbf16>
    %cst_15 = arith.constant dense<0.000000e+00> : vector<128x128xf32>
    %36 = tpu.matmul %30, %35, %cst_15 {dimension_numbers = #tpu.dot_dimension_numbers<[1], [0], [0], [1], [0, 0, 1, 1], [], []>} : vector<128x128xbf16>, vector<128x128xbf16>, vector<128x128xf32> -> vector<128x128xf32>
    %37 = arith.mulf %36, %5 : vector<128x128xf32>
    %38 = vector.extract_strided_slice %37 {offsets = [0, 0], sizes = [16, 128], strides = [1, 1]} : vector<128x128xf32> to vector<16x128xf32>
    %39 = vector.extract_strided_slice %37 {offsets = [16, 0], sizes = [16, 128], strides = [1, 1]} : vector<128x128xf32> to vector<16x128xf32>
    %40 = arith.addf %38, %39 : vector<16x128xf32>
    %41 = vector.extract_strided_slice %37 {offsets = [32, 0], sizes = [16, 128], strides = [1, 1]} : vector<128x128xf32> to vector<16x128xf32>
    %42 = arith.addf %40, %41 : vector<16x128xf32>
    %43 = vector.extract_strided_slice %37 {offsets = [48, 0], sizes = [16, 128], strides = [1, 1]} : vector<128x128xf32> to vector<16x128xf32>
    %44 = arith.addf %42, %43 : vector<16x128xf32>
    %45 = vector.extract_strided_slice %37 {offsets = [64, 0], sizes = [16, 128], strides = [1, 1]} : vector<128x128xf32> to vector<16x128xf32>
    %46 = arith.addf %44, %45 : vector<16x128xf32>
    %47 = vector.extract_strided_slice %37 {offsets = [80, 0], sizes = [16, 128], strides = [1, 1]} : vector<128x128xf32> to vector<16x128xf32>
    %48 = arith.addf %46, %47 : vector<16x128xf32>
    %49 = vector.extract_strided_slice %37 {offsets = [96, 0], sizes = [16, 128], strides = [1, 1]} : vector<128x128xf32> to vector<16x128xf32>
    %50 = arith.addf %48, %49 : vector<16x128xf32>
    %51 = vector.extract_strided_slice %37 {offsets = [112, 0], sizes = [16, 128], strides = [1, 1]} : vector<128x128xf32> to vector<16x128xf32>
    %52 = arith.addf %50, %51 : vector<16x128xf32>
    %53 = arith.truncf %52 : vector<16x128xf32> to vector<16x128xbf16>
    %c0_16 = arith.constant 0 : index
    %c0_17 = arith.constant 0 : index
    %54 = vector.load %arg6[%c0_16, %c0_17] : memref<128x128xbf16, #tpu.memory_space<vmem>>, vector<128x128xbf16>
    %cst_18 = arith.constant dense<0.000000e+00> : vector<16x128xf32>
    %55 = tpu.matmul %53, %54, %cst_18 {dimension_numbers = #tpu.dot_dimension_numbers<[1], [0], [0], [1], [0, 0, 1, 1], [], []>} : vector<16x128xbf16>, vector<128x128xbf16>, vector<16x128xf32> -> vector<16x128xf32>
    %c0_19 = arith.constant 0 : index
    %c0_20 = arith.constant 0 : index
    %56 = vector.load %arg7[%c0_19, %c0_20] : memref<1x128xf32, #tpu.memory_space<vmem>>, vector<1x128xf32>
    %57 = vector.broadcast %56 : vector<1x128xf32> to vector<16x128xf32>
    %58 = arith.addf %55, %57 : vector<16x128xf32>
    %59 = arith.addf %58, %1 : vector<16x128xf32>
    %cst_21 = arith.constant dense<0.000000e+00> : vector<16xf32>
    %60 = vector.multi_reduction <add>, %59, %cst_21 [1] : vector<16x128xf32> to vector<16xf32>
    %61 = vector.shape_cast %60 : vector<16xf32> to vector<16x1xf32>
    %cst_22 = arith.constant 0.013888889 : f32
    %62 = vector.broadcast %cst_22 : f32 to vector<16x1xf32>
    %63 = arith.mulf %61, %62 : vector<16x1xf32>
    %64 = arith.mulf %59, %59 : vector<16x128xf32>
    %cst_23 = arith.constant dense<0.000000e+00> : vector<16xf32>
    %65 = vector.multi_reduction <add>, %64, %cst_23 [1] : vector<16x128xf32> to vector<16xf32>
    %66 = vector.shape_cast %65 : vector<16xf32> to vector<16x1xf32>
    %cst_24 = arith.constant 0.013888889 : f32
    %67 = vector.broadcast %cst_24 : f32 to vector<16x1xf32>
    %68 = arith.mulf %66, %67 : vector<16x1xf32>
    %69 = arith.mulf %63, %63 : vector<16x1xf32>
    %70 = arith.subf %68, %69 : vector<16x1xf32>
    %71 = vector.broadcast %63 : vector<16x1xf32> to vector<16x128xf32>
    %72 = arith.subf %59, %71 : vector<16x128xf32>
    %cst_25 = arith.constant 9.99999974E-6 : f32
    %73 = vector.broadcast %cst_25 : f32 to vector<16x1xf32>
    %74 = arith.addf %70, %73 : vector<16x1xf32>
    %75 = math.rsqrt %74 : vector<16x1xf32>
    %76 = vector.broadcast %75 : vector<16x1xf32> to vector<16x128xf32>
    %77 = arith.mulf %72, %76 : vector<16x128xf32>
    %c0_26 = arith.constant 0 : index
    %c0_27 = arith.constant 0 : index
    %78 = vector.load %arg8[%c0_26, %c0_27] : memref<1x128xf32, #tpu.memory_space<vmem>>, vector<1x128xf32>
    %79 = vector.broadcast %78 : vector<1x128xf32> to vector<16x128xf32>
    %80 = arith.mulf %77, %79 : vector<16x128xf32>
    %c0_28 = arith.constant 0 : index
    %c0_29 = arith.constant 0 : index
    %81 = vector.load %arg9[%c0_28, %c0_29] : memref<1x128xf32, #tpu.memory_space<vmem>>, vector<1x128xf32>
    %82 = vector.broadcast %81 : vector<1x128xf32> to vector<16x128xf32>
    %83 = arith.addf %80, %82 : vector<16x128xf32>
    %84 = vector.shape_cast %83 : vector<16x128xf32> to vector<1x16x128xf32>
    %c0_30 = arith.constant 0 : index
    %c0_31 = arith.constant 0 : index
    %c0_32 = arith.constant 0 : index
    %85 = vector.load %arg10[%c0_30, %c0_31, %c0_32] : memref<1x16x128xf32, #tpu.memory_space<vmem>>, vector<1x16x128xf32>
    tpu.vector_store %arg10[%c0_30, %c0_31, %c0_32], %84 {strides = array<i32>} : memref<1x16x128xf32, #tpu.memory_space<vmem>>, vector<1x16x128xf32>,
    return
  }
  func.func @transform_0(%arg0: i32) -> (i32, i32, i32) {
    %c0_i32 = arith.constant 0 : i32
    %c0_i32_0 = arith.constant 0 : i32
    %c0_i32_1 = arith.constant 0 : i32
    return %arg0, %c0_i32, %c0_i32_0 : i32, i32, i32
  }
  func.func @transform_1(%arg0: i32) -> (i32, i32) {
    %c0_i32 = arith.constant 0 : i32
    %c0_i32_0 = arith.constant 0 : i32
    %c0_i32_1 = arith.constant 0 : i32
    return %c0_i32, %c0_i32_0 : i32, i32
  }
  func.func @transform_2(%arg0: i32) -> (i32, i32) {
    %c0_i32 = arith.constant 0 : i32
    %c0_i32_0 = arith.constant 0 : i32
    %c0_i32_1 = arith.constant 0 : i32
    return %c0_i32, %c0_i32_0 : i32, i32
  }
  func.func @transform_3(%arg0: i32) -> (i32, i32) {
    %c0_i32 = arith.constant 0 : i32
    %c0_i32_0 = arith.constant 0 : i32
    %c0_i32_1 = arith.constant 0 : i32
    return %c0_i32, %c0_i32_0 : i32, i32
  }
  func.func @transform_4(%arg0: i32) -> (i32, i32) {
    %c0_i32 = arith.constant 0 : i32
    %c0_i32_0 = arith.constant 0 : i32
    %c0_i32_1 = arith.constant 0 : i32
    return %c0_i32, %c0_i32_0 : i32, i32
  }
  func.func @transform_5(%arg0: i32) -> (i32, i32) {
    %c0_i32 = arith.constant 0 : i32
    %c0_i32_0 = arith.constant 0 : i32
    %c0_i32_1 = arith.constant 0 : i32
    return %c0_i32, %c0_i32_0 : i32, i32
  }
  func.func @transform_6(%arg0: i32) -> (i32, i32) {
    %c0_i32 = arith.constant 0 : i32
    %c0_i32_0 = arith.constant 0 : i32
    %c0_i32_1 = arith.constant 0 : i32
    return %c0_i32, %c0_i32_0 : i32, i32
  }
  func.func @transform_7(%arg0: i32) -> (i32, i32) {
    %c0_i32 = arith.constant 0 : i32
    %c0_i32_0 = arith.constant 0 : i32
    %c0_i32_1 = arith.constant 0 : i32
    return %c0_i32, %c0_i32_0 : i32, i32
  }
  func.func @transform_8(%arg0: i32) -> (i32, i32) {
    %c0_i32 = arith.constant 0 : i32
    %c0_i32_0 = arith.constant 0 : i32
    %c0_i32_1 = arith.constant 0 : i32
    return %c0_i32, %c0_i32_0 : i32, i32
  }
  func.func @transform_9(%arg0: i32) -> (i32, i32, i32) {
    %c0_i32 = arith.constant 0 : i32
    %c0_i32_0 = arith.constant 0 : i32
    %c0_i32_1 = arith.constant 0 : i32
    return %arg0, %c0_i32, %c0_i32_0 : i32, i32, i32
  }
}

</mosaic_0001>

<bundles_post_ra>
// kernel: tpu_custom_call.1
= control target key start
LH: loop header
LB: loop body
LE: loop exit
PB: predicated region body
PF: predicated region fallthrough
CT: control target
= control target key end

     0   :  { %s2665_s0 = inlined_call_operand.hbm [shape: f32[2,16,128], index: 0, kind: input, shape index: {}]   ;;  %s2666_s1 = inlined_call_operand.hbm [shape: f32[16,384], index: 1, kind: input, shape index: {}]   ;;  %s2667_s2 = inlined_call_operand.hbm [shape: bf16[128,384], index: 2, kind: input, shape index: {}]   ;;  %s2668_s3 = inlined_call_operand.hbm [shape: f32[128,128], index: 3, kind: input, shape index: {}]   ;;  %s2669_s4 = inlined_call_operand.hbm [shape: f32[128,128], index: 4, kind: input, shape index: {}]   ;;  %s2670_s5 = inlined_call_operand.hbm [shape: bf16[128,128], index: 5, kind: input, shape index: {}]   ;;  %s2671_s6 = inlined_call_operand.vmem [shape: f32[1,128], index: 6, kind: input, shape index: {}]   ;;  %s2672_s7 = inlined_call_operand.vmem [shape: f32[1,128], index: 7, kind: input, shape index: {}]   ;;  %s2673_s8 = inlined_call_operand.vmem [shape: f32[1,128], index: 8, kind: input, shape index: {}]   ;;  %s2674_s9 = inlined_call_operand.hbm [shape: f32[2,16,128], index: 9, kind: output, shape index: {}]  }
   0x1   :  { %2683 = sst [smem:[#allocation19_spill]] %s2666_s1 }
   0x2   :  { %2684 = sst [smem:[#allocation20_spill]] %s2668_s3 }
   0x3   :  { %2685 = sst [smem:[#allocation21_spill]] %s2674_s9 }
   0x4   :  { %14 = vsyncpa [#allocation3], 0 }
   0x5   :  { %16 = vsyncpa [#allocation3 + $0x1], 0 }
   0x6   :  { %17 = vsyncpa [#allocation6], 0 }
   0x7   :  { %18 = vsyncpa [#allocation9], 0 }
   0x8   :  { %19 = vsyncpa [#allocation12], 0 }
   0x9   :  { %20 = vsyncpa [#allocation4], 0 }
   0xa   :  { %22 = vsyncpa [#allocation4 + $0x1], 0  ;;  %s2108_s30 = smov 0   ;;  %s2110_s10 = smov 0  }
   0xb   :  { %s2112_s11 = smov 0   ;;  %s2114_s12 = smov 0  }
   0xc LB: > { %s2038_s13 = smov [#allocation5]   ;;  %s2129_s15 = sadd.s32 4294967295, %s2036_s12   ;;  %s2036_s12 = sphi %s2114_s12, %s2712_s12   ;;  %s2032_s11 = sphi %s2112_s11, %s2711_s11   ;;  %s2028_s10 = sphi %s2110_s10, %s2710_s10   ;;  %s2024_s30 = sphi %s2108_s30, %s2709_s30  }
   0xd   : > { %s265_s14 = sshll.u32 %s2038_s13, 4  ;;  %p1375_p0 = scmp.ge.s32.totalorder %s2036_s12, 1  ;;  %s2134_s14 = int_to_ptr.vmem [resolvable:$true] %s265_s14 }
   0xe   : > { %p2676_p1 = scmp.eq.s32.totalorder %s2129_s15, 0  ;;  %p253_p2 = scmp.lt.s32.totalorder %s2036_s12, 3 }
   0xf   : > { %s2039_s17 = smov [#allocation8]   ;;  %s2040_s20 = smov [#allocation7]  }
  0x10   : > { %p2136_p3 = pnand %p1375_p0, %p253_p2  ;;  %s291_s18 = sshll.u32 %s2039_s17, 4  ;;  %s2149_s18 = int_to_ptr.vmem [resolvable:$true] %s291_s18 }
  0x11   : > { %s2151_s21 = sshll.u32 %s2040_s20, 4  ;;  %s2688_s1 = sld [smem:[#allocation19_spill]]  ;;  %s279_s21 = int_to_ptr.vmem [resolvable:$true] %s2151_s21 }
  0x12   : > { %s2686_s16 = scalar_select %p2136_p3, 1, 0 }
  0x13   : > { %p1594_p5 = pneg %p2136_p3 }
  0x15   : > { %p2145_p6 = pnand %p1594_p5, %p2676_p1 }
  0x17   : > { %s1788_s24 = scalar_lea.hbm %s2688_s1, 768  ;;  %p2161_p8 = pneg %p2145_p6 }
  0x18   : > { %p1789_p7 = scmp.ne.s32.totalorder %s2688_s1, %s1788_s24  ;;  %p1795_p11 = scmp.lt.u32.totalorder %s1788_s24, %s2688_s1 }
  0x1a   : > { %p1791_p9 = pnand %p2161_p8, %p1789_p7 }
  0x1c   : > { %p1792_p10 = pneg %p1791_p9 }
  0x1e   : > { %p1797_p12 = pnand %p1795_p11, %p1792_p10 }
  0x20   : > { %1800 = shalt.err (!%p1797_p12)
}
  0x21   : > { %s1801_s13 = scalar_lea.vmem %s2134_s14, 768  ;;  %p1809_p5 = scmp.lt.s32.totalorder %s2134_s14, %s2134_s14 }
  0x22   : > { %p1802_p13 = scmp.ne.s32.totalorder %s2134_s14, %s1801_s13  ;;  %p1810_p4 = scmp.lt.s32.totalorder %s1801_s13, %s1801_s13 }
  0x24   : > { %p1804_p0 = pnand %p1802_p13, %p2161_p8  ;;  %p1811_p7 = por %p1810_p4, %p1809_p5 }
  0x26   : > { %p1805_p2 = pneg %p1804_p0 }
  0x28   : > { %p1812_p9 = pnand %p1811_p7, %p1805_p2 }
  0x2a   : > { %1815 = shalt.err (!%p1812_p9)
}
  0x2b   : > { %s2041_s17 = smov 384   ;;  %s2042_s20 = smov 24  }
  0x2c   : > { %1597 = dma.hbm_to_vmem [thread:$0]  (!%p2145_p6), %s2688_s1, 768, %s2134_s14, [#allocation6], %s2041_s17, %s2041_s17, %s2042_s20  }
  0x2d   : > { %s2690_s3 = sld [smem:[#allocation20_spill]] }
  0x33   : > { %s1816_s26 = scalar_lea.hbm %s2690_s3, 2048 }
  0x34   : > { %p1817_p4 = scmp.ne.s32.totalorder %s2690_s3, %s1816_s26  ;;  %p1823_p12 = scmp.lt.u32.totalorder %s1816_s26, %s2690_s3 }
  0x36   : > { %p1819_p10 = pnand %p1817_p4, %p2161_p8 }
  0x38   : > { %p1820_p11 = pneg %p1819_p10 }
  0x3a   : > { %p1825_p13 = pnand %p1823_p12, %p1820_p11 }
  0x3c   : > { %1828 = shalt.err (!%p1825_p13)
}
  0x3d   : > { %s1829_s14 = scalar_lea.vmem %s2149_s18, 2048  ;;  %p1837_p7 = scmp.lt.s32.totalorder %s2149_s18, %s2149_s18 }
  0x3e   : > { %p1830_p0 = scmp.ne.s32.totalorder %s2149_s18, %s1829_s14  ;;  %p1838_p9 = scmp.lt.s32.totalorder %s1829_s14, %s1829_s14 }
  0x40   : > { %p1832_p2 = pnand %p1830_p0, %p2161_p8  ;;  %p1839_p4 = por %p1838_p9, %p1837_p7 }
  0x42   : > { %p1833_p5 = pneg %p1832_p2 }
  0x44   : > { %p1840_p10 = pnand %p1839_p4, %p1833_p5 }
  0x46   : > { %1843 = shalt.err (!%p1840_p10)
}
  0x47   : > { %s2678_s17 = smov 128   ;;  %s2680_s9 = smov 8  }
  0x48   : > { %1603 = dma.hbm_to_vmem [thread:$0]  (!%p2145_p6), %s2690_s3, 2048, %s2149_s18, [#allocation9], %s2678_s17, %s2678_s17, %s2680_s9  }
  0x49   : > { %s1844_s25 = scalar_lea.hbm %s2667_s2, 3072 }
  0x4a   : > { %p1845_p11 = scmp.ne.s32.totalorder %s2667_s2, %s1844_s25  ;;  %p1851_p0 = scmp.lt.u32.totalorder %s1844_s25, %s2667_s2 }
  0x4c   : > { %p1847_p12 = pnand %p1845_p11, %p2161_p8 }
  0x4e   : > { %p1848_p13 = pneg %p1847_p12 }
  0x50   : > { %p1853_p2 = pnand %p1851_p0, %p1848_p13 }
  0x52   : > { %1856 = shalt.err (!%p1853_p2)
}
  0x53   : > { %s1857_s14 = scalar_lea.vmem %s279_s21, 3072  ;;  %p1865_p4 = scmp.lt.s32.totalorder %s279_s21, %s279_s21 }
  0x54   : > { %p1858_p5 = scmp.ne.s32.totalorder %s279_s21, %s1857_s14  ;;  %p1866_p10 = scmp.lt.s32.totalorder %s1857_s14, %s1857_s14 }
  0x56   : > { %p1860_p7 = pnand %p1858_p5, %p2161_p8  ;;  %p1867_p1 = por %p1866_p10, %p1865_p4 }
  0x58   : > { %p1861_p9 = pneg %p1860_p7 }
  0x5a   : > { %p1868_p3 = pnand %p1867_p1, %p1861_p9 }
  0x5c   : > { %1871 = shalt.err (!%p1868_p3)
}
  0x5d   : > { %s2045_s18 = smov 192   ;;  %s2046_s20 = smov 12  }
  0x5e   : > { %1600 = dma.hbm_to_vmem [thread:$0]  (!%p2145_p6), %s2667_s2, 3072, %s279_s21, [#allocation6], %s2045_s18, %s2045_s18, %s2046_s20  }
  0x5f   : > { %s2047_s24 = smov [#allocation10]   ;;  %s2048_s26 = smov [#allocation11]  }
  0x60   : > { %s304_s25 = sshll.u32 %s2047_s24, 4  ;;  %s317_s28 = sshll.u32 %s2048_s26, 4  ;;  %s305_s25 = int_to_ptr.vmem [resolvable:$true] %s304_s25  ;;  %s318_s28 = int_to_ptr.vmem [resolvable:$true] %s317_s28 }
  0x61   : > { %s1872_s14 = scalar_lea.hbm %s2669_s4, 2048 }
  0x62   : > { %p1873_p1 = scmp.ne.s32.totalorder %s2669_s4, %s1872_s14  ;;  %p1879_p12 = scmp.lt.u32.totalorder %s1872_s14, %s2669_s4 }
  0x64   : > { %p1875_p3 = pnand %p1873_p1, %p2161_p8 }
  0x66   : > { %p1876_p11 = pneg %p1875_p3 }
  0x68   : > { %p1881_p13 = pnand %p1879_p12, %p1876_p11 }
  0x6a   : > { %1884 = shalt.err (!%p1881_p13)
}
  0x6b   : > { %s1885_s21 = scalar_lea.vmem %s305_s25, 2048  ;;  %p1893_p7 = scmp.lt.s32.totalorder %s305_s25, %s305_s25 }
  0x6c   : > { %p1886_p0 = scmp.ne.s32.totalorder %s305_s25, %s1885_s21  ;;  %p1894_p9 = scmp.lt.s32.totalorder %s1885_s21, %s1885_s21 }
  0x6e   : > { %p1888_p2 = pnand %p1886_p0, %p2161_p8  ;;  %p1895_p4 = por %p1894_p9, %p1893_p7 }
  0x70   : > { %p1889_p5 = pneg %p1888_p2 }
  0x72   : > { %p1896_p10 = pnand %p1895_p4, %p1889_p5 }
  0x74   : > { %1899 = shalt.err (!%p1896_p10)
}
  0x75   : > { %s2691_s17 = smov 8   ;;  %s2692_s9 = smov 128  }
  0x76   : > { %1606 = dma.hbm_to_vmem [thread:$0]  (!%p2145_p6), %s2669_s4, 2048, %s305_s25, [#allocation9], %s2692_s9, %s2692_s9, %s2691_s17  }
  0x77   : > { %s1900_s22 = scalar_lea.hbm %s2670_s5, 1024 }
  0x78   : > { %p1901_p1 = scmp.ne.s32.totalorder %s2670_s5, %s1900_s22  ;;  %p1907_p12 = scmp.lt.u32.totalorder %s1900_s22, %s2670_s5 }
  0x7a   : > { %p1903_p3 = pnand %p1901_p1, %p2161_p8 }
  0x7c   : > { %p1904_p11 = pneg %p1903_p3 }
  0x7e   : > { %p1909_p13 = pnand %p1907_p12, %p1904_p11 }
  0x80   : > { %1912 = shalt.err (!%p1909_p13)
}
  0x81   : > { %s1913_s13 = scalar_lea.vmem %s318_s28, 1024  ;;  %p1921_p7 = scmp.lt.s32.totalorder %s318_s28, %s318_s28 }
  0x82   : > { %p1914_p0 = scmp.ne.s32.totalorder %s318_s28, %s1913_s13  ;;  %p1922_p9 = scmp.lt.s32.totalorder %s1913_s13, %s1913_s13 }
  0x84   : > { %p1916_p2 = pnand %p1914_p0, %p2161_p8  ;;  %p1923_p4 = por %p1922_p9, %p1921_p7 }
  0x86   : > { %p1917_p5 = pneg %p1916_p2 }
  0x88   : > { %p1924_p10 = pnand %p1923_p4, %p1917_p5 }
  0x8a   : > { %1927 = shalt.err (!%p1924_p10)
}
  0x8b   : > { %s2049_s25 = smov 64   ;;  %s2050_s27 = smov 4  }
  0x8c   : > { %1609 = dma.hbm_to_vmem [thread:$0]  (!%p2145_p6), %s2670_s5, 1024, %s318_s28, [#allocation12], %s2049_s25, %s2049_s25, %s2050_s27  }
  0x8d   : > { %s1374_s1 = sadd.s32 4294967294, %s2036_s12   ;;  %s2268_s3 = sadd.s32 1, %s2036_s12  }
  0x8e   : > { %s35_s18 = sadd.s32 1, %s2032_s11  ;;  %s32_s20 = ssub.s32 %s2036_s12, %s2268_s3 }
  0x8f   : > { %p42_p8 = scmp.ne.s32.totalorder %s2032_s11, %s2028_s10  ;;  %p33_p1 = scmp.eq.s32.totalorder %s32_s20, 0 }
  0x90   : > { %p43_p3 = scmp.eq.s32.totalorder %s2036_s12, 0  ;;  %p48_p11 = scmp.ne.s32.totalorder %s2028_s10, %s2024_s30 }
  0x91   : > { %p240_p12 = scmp.eq.s32.totalorder %s2129_s15, 1  ;;  %p2693_p0 = scmp.eq.s32.totalorder %s2129_s15, 0 }
  0x92   : > { %s2280_s22 = scalar_select %p33_p1, %s2032_s11, %s35_s18  }
  0x93   : > { %p44_p13 = por %p43_p3, %p42_p8  ;;  %p2284_p2 = por %p2693_p0, %p48_p11 }
  0x94   : > { %p2288_p6 = por %p240_p12, %p42_p8  ;;  %p246_p5 = scmp.eq.s32.totalorder %s1374_s1, 1 }
  0x95   : > { %p1623_p7 = scmp.lt.s32.totalorder %s2036_s12, 2  ;;  %s340_s23 = sand.u32 1, %s2032_s11  }
  0x96   : > { %s2695_s28 = scalar_select %p2288_p6, 1, 0 }
  0x97   : > { %p2294_p9 = por %p246_p5, %p48_p11  ;;  %s1382_s26 = sshll.u32 %s340_s23, 4 }
  0x98   : > { %s1433_s29 = sshll.u32 %s2036_s12, 8  ;;  %s344_s14 = scalar_lea.vmem [#allocation2], %s1382_s26 }
  0x99   : > { %s2696_s24 = scalar_select %p2294_p9, 1, 0 }
  0x9a   : > { %s2302_s27 = scalar_lea.hbm %s2665_s0, %s1433_s29  ;;  %s351_s21 = sshll.u32 %s344_s14, 4  ;;  %s2308_s21 = int_to_ptr.vmem [resolvable:$true] %s351_s21 }
  0x9b   : > { %p2304_p4 = pnand %p1623_p7, %p44_p13  ;;  %s2310_s18 = scalar_lea.sflag [#allocation3], %s340_s23 }
  0x9c   : > { %s1928_s20 = scalar_lea.hbm %s2302_s27, 256  ;;  %s1933_s13 = scalar_lea.hbm %s2665_s0, 512 }
  0x9d   : > { %p1929_p10 = scmp.ne.s32.totalorder %s2302_s27, %s1928_s20  ;;  %p1930_p8 = pneg %p2304_p4 }
  0x9e   : > { %p1934_p11 = scmp.lt.u32.totalorder %s2302_s27, %s2665_s0  ;;  %p1935_p12 = scmp.lt.u32.totalorder %s1933_s13, %s1928_s20 }
  0x9f   : > { %p1931_p1 = pnand %p1930_p8, %p1929_p10  ;;  %p1937_p0 = scmp.lt.u32.totalorder %s1928_s20, %s2302_s27 }
  0xa0   : > { %p1936_p13 = por %p1935_p12, %p1934_p11 }
  0xa1   : > { %p1932_p3 = pneg %p1931_p1 }
  0xa2   : > { %p1938_p5 = por %p1937_p0, %p1936_p13 }
  0xa4   : > { %p1939_p7 = pnand %p1938_p5, %p1932_p3 }
  0xa6   : > { %1942 = shalt.err (!%p1939_p7)
}
  0xa7   : > { %s1943_s23 = scalar_lea.vmem %s2308_s21, 256  ;;  %s2051_s26 = smov [#allocation2]  }
  0xa8   : > { %p1944_p10 = scmp.ne.s32.totalorder %s2308_s21, %s1943_s23  ;;  %s1948_s29 = sshll.u32 %s2051_s26, 4  ;;  %s1949_s29 = int_to_ptr.vmem [resolvable:$false] %s1948_s29 }
  0xa9   : > { %s1950_s25 = scalar_lea.vmem %s1949_s29, 512  ;;  %p1951_p6 = scmp.lt.s32.totalorder %s2308_s21, %s1949_s29 }
  0xaa   : > { %p1946_p1 = pnand %p1944_p10, %p1930_p8  ;;  %p1952_p11 = scmp.lt.s32.totalorder %s1950_s25, %s1943_s23 }
  0xac   : > { %p1947_p9 = pneg %p1946_p1  ;;  %p1953_p12 = por %p1952_p11, %p1951_p6 }
  0xae   : > { %p1954_p13 = pnand %p1953_p12, %p1947_p9 }
  0xb0   : > { %1957 = shalt.err (!%p1954_p13)
}
  0xb1   : > { %1613 = dma.hbm_to_vmem [thread:$0]  (!%p2304_p4), %s2302_s27, 256, %s2308_s21, %s2310_s18, %s2692_s9, %s2692_s9, %s2691_s17  }
  0xb2   : > { %p2698_p8 = scmp.ne.s32.totalorder %s2686_s16, 0 }
  0xb3   : > { %s2344_s20 = sand.u32 (!%p2698_p8), 1, %s2028_s10  }
  0xb4   : > { %363 = sbr.rel (%p2698_p8) target bundleno = 1700 (0x6a4), region = 56  ;;  %s1386_s13 = sshll.u32 (!%p2698_p8), %s2344_s20, 4 }
  0xb5   : > { %s366_s14 = scalar_lea.sflag (!%p2698_p8), [#allocation3], %s2344_s20  ;;  %s2350_s1 = scalar_lea.vmem (!%p2698_p8), [#allocation2], %s1386_s13 }
  0xbb   : > { %2003 = dma.done.wait (%p2284_p2), %s366_s14, 256  }
  0xbc   : > { %2005 = vsyncadd (%p2284_p2), %s366_s14, 4294967040  ;;  %p2699_p6 = scmp.eq.s32.totalorder %s2129_s15, 0 }
  0xbe   : > { %2007 = dma.done.wait (%p2699_p6), [#allocation6], 3840   ;;  %p2700_p9 = pmov %p2699_p6 }
  0xbf   : > { %p2701_p4 = pmov %p2699_p6 }
  0xc0   : > { %2009 = vsyncadd (%p2700_p9), [#allocation6], 4294963456 }
  0xc1   : > { %2011 = dma.done.wait (%p2701_p4), [#allocation9], 4096   ;;  %p2702_p3 = pmov %p2701_p4 }
  0xc3   : > { %2013 = vsyncadd (%p2702_p3), [#allocation9], 4294963200  ;;  %p2703_p0 = pmov %p2702_p3 }
  0xc5   : > { %2015 = dma.done.wait (%p2703_p0), [#allocation12], 1024   ;;  %p2704_p5 = pmov %p2703_p0 }
  0xc6   : > { %v2052_v0 = vmov 0   ;;  %v1680_v1 = vld [vmem:[#allocation7 + $0x4] ss:$12 sps:$4 sm:$0xff]   ;;  %v1682_v2 = vld [vmem:[#allocation7] ss:$12 sps:$4 sm:$0xff]   ;;  %v2053_v20 = vmov 0.0  }
  0xc7   : > { %2017 = vsyncadd (%p2704_p5), [#allocation12], 4294966272  ;;  %620 = vmatprep.mubr.bf16.mxu0 %v2052_v0  ;;  %588 = vmatprep.subr.bf16.mxu0 %v1680_v1  ;;  %v1683_v3 = vld [vmem:[#allocation7 + $0x1c] ss:$12 sps:$4 sm:$0xff]   ;;  %v1685_v4 = vld [vmem:[#allocation7 + $0x18] ss:$12 sps:$4 sm:$0xff]  }
  0xc8   : > { %589 = vmatpush1.bf16.msra.mxu0 %v1682_v2  ;;  %v1686_v5 = vld [vmem:[#allocation7 + $0x34] ss:$12 sps:$4 sm:$0xff]   ;;  %v1688_v6 = vld [vmem:[#allocation7 + $0x30] ss:$12 sps:$4 sm:$0xff]   ;;  %v1689_v7 = vld [vmem:[#allocation7 + $0x4c] ss:$12 sps:$4 sm:$0xff]   ;;  %1478 = vmatprep.subr.bf16.mxu1 %v2053_v20 }
  0xc9   : > { %590 = vmatprep.subr.bf16.mxu0 %v1683_v3  ;;  %v1691_v8 = vld [vmem:[#allocation7 + $0x48] ss:$12 sps:$4 sm:$0xff]   ;;  %v1692_v9 = vld [vmem:[#allocation7 + $0x64] ss:$12 sps:$4 sm:$0xff]   ;;  %v1694_v10 = vld [vmem:[#allocation7 + $0x60] ss:$12 sps:$4 sm:$0xff]  }
  0xca   : > { %v1695_v11 = vld [vmem:[#allocation7 + $0x7c] ss:$12 sps:$4 sm:$0xff]   ;;  %v1697_v12 = vld [vmem:[#allocation7 + $0x78] ss:$12 sps:$4 sm:$0xff]   ;;  %v1698_v13 = vld [vmem:[#allocation7 + $0x94] ss:$12 sps:$4 sm:$0xff]  }
  0xcb   : > { %v1700_v14 = vld [vmem:[#allocation7 + $0x90] ss:$12 sps:$4 sm:$0xff]   ;;  %v1701_v15 = vld [vmem:[#allocation7 + $0xac] ss:$12 sps:$4 sm:$0xff]   ;;  %v1703_v16 = vld [vmem:[#allocation7 + $0xa8] ss:$12 sps:$4 sm:$0xff]  }
  0xcc   : > { %591 = vmatpush1.bf16.msra.mxu0 %v1685_v4  ;;  %v2369_v17 = vld [vmem:[%s2350_s1] sm:$0xff]  ;;  %v2372_v18 = vld [vmem:[%s2350_s1 + $0x8] sm:$0xff]  ;;  %vm2054_vm0 = vmmov 0   ;;  %s1434_s18 = sshll.u32 %s2129_s15, 8  ;;  %s423_s23 = scalar_lea.vmem [#allocation13], %s1386_s13 }
  0xcd   : > { %592 = vmatprep.subr.bf16.mxu0 %v1686_v5  ;;  %v2376_v19 = vpack.c.bf16 %v2372_v18, %v2369_v17  ;;  %1494 = vmatprep.mubr.msk.bf16.mxu1 %vm2054_vm0, %v2053_v20  ;;  %v688_v21 = vld [vmem:[#allocation5] sm:$0xff]  ;;  %v692_v22 = vld [vmem:[#allocation5 + $0x8] sm:$0xff]  ;;  %v689_v23 = vld [vmem:[#allocation5 + $0x18] sm:$0xff]  ;;  %s1253_s26 = sshll.u32 %s423_s23, 4  ;;  %s2705_s14 = sld [smem:[#allocation21_spill]]  ;;  %s2621_s26 = int_to_ptr.vmem [resolvable:$true] %s1253_s26 }
  0xce   : > { %v693_v25 = vld [vmem:[#allocation5 + $0x20] sm:$0xff]  ;;  %v2385_v26 = vld [vmem:[#allocation10] sm:$0xff]  ;;  %v2395_v34 = vld [vmem:[#allocation10 + $0x8] sm:$0xff]  ;;  %s1240_s16 = scalar_lea.sflag [#allocation4], %s2344_s20  ;;  %s1958_s15 = scalar_lea.vmem %s2621_s26, 256 }
  0xcf   : > { %v2387_v27 = vld [vmem:[#allocation10 + $0x10] sm:$0xff]  ;;  %v2389_v29 = vld [vmem:[#allocation10 + $0x20] sm:$0xff]  ;;  %v2397_v35 = vld [vmem:[#allocation10 + $0x18] sm:$0xff]  ;;  %p1959_p2 = scmp.ne.s32.totalorder %s2621_s26, %s1958_s15  ;;  %p2706_p7 = scmp.ne.s32.totalorder %s2695_s28, 0 }
  0xd0   : > { %593 = vmatpush1.bf16.msra.mxu0 %v1688_v6  ;;  %v2391_v30 = vld [vmem:[#allocation10 + $0x30] sm:$0xff]  ;;  %v2393_v31 = vld [vmem:[#allocation10 + $0x40] sm:$0xff]  ;;  %v2401_v40 = vld [vmem:[#allocation10 + $0x28] sm:$0xff]  ;;  %s2055_s13 = smov [#allocation13]  }
  0xd1   : > { %594 = vmatprep.subr.bf16.mxu0 %v1689_v7  ;;  %v2399_v36 = vld [vmem:[#allocation10 + $0x50] sm:$0xff]  ;;  %v2403_v41 = vld [vmem:[#allocation10 + $0x38] sm:$0xff]  ;;  %v2405_v42 = vld [vmem:[#allocation10 + $0x48] sm:$0xff]  ;;  %p1960_p10 = pnand %p1959_p2, %p2706_p7  ;;  %s1962_s17 = sshll.u32 %s2055_s13, 4  ;;  %s1963_s17 = int_to_ptr.vmem [resolvable:$false] %s1962_s17 }
  0xd2   : > { %v2410_v47 = vld [vmem:[#allocation10 + $0x58] sm:$0xff]  ;;  %v2412_v48 = vld [vmem:[#allocation10 + $0x60] sm:$0xff]  ;;  %v2414_v49 = vld [vmem:[#allocation10 + $0x68] sm:$0xff]  ;;  %s1964_s9 = scalar_lea.vmem %s1963_s17, 512  ;;  %p1965_p11 = scmp.lt.s32.totalorder %s2621_s26, %s1963_s17 }
  0xd3   : > { %v2427_v62 = vld [vmem:[#allocation10 + $0x70] sm:$0xff]  ;;  %v2429_v63 = vld [vmem:[#allocation10 + $0x78] sm:$0xff]  ;;  %s2619_s1 = scalar_lea.hbm %s2705_s14, %s1434_s18  ;;  %p1961_p1 = pneg %p1960_p10 }
  0xd4   : > { %595 = vmatpush1.bf16.msra.mxu0 %v1691_v8  ;;  %p1966_p12 = scmp.lt.s32.totalorder %s1964_s9, %s1958_s15 }
  0xd5   : > { %596 = vmatprep.subr.bf16.mxu0 %v1692_v9 }
  0xd6   : > { %p1967_p13 = por %p1966_p12, %p1965_p11 }
  0xd8   : > { %597 = vmatpush1.bf16.msra.mxu0 %v1694_v10  ;;  %v1704_v10 = vld [vmem:[#allocation7 + $0x8] ss:$12 sps:$4 sm:$0xff]   ;;  %p1968_p8 = pnand %p1967_p13, %p1961_p1 }
  0xd9   : > { %598 = vmatprep.subr.bf16.mxu0 %v1695_v11  ;;  %1479 = vmatpush3.bf16.msra.mxu1 %v1704_v10  ;;  %v1705_v11 = vld [vmem:[#allocation7 + $0x20] ss:$12 sps:$4 sm:$0xff]  }
  0xda   : > { %1480 = vmatprep.subr.bf16.mxu1 %v2053_v20 }
  0xdc   : > { %599 = vmatpush1.bf16.msra.mxu0 %v1697_v12  ;;  %v1706_v12 = vld [vmem:[#allocation7 + $0x38] ss:$12 sps:$4 sm:$0xff]  }
  0xdd   : > { %600 = vmatprep.subr.bf16.mxu0 %v1698_v13  ;;  %1481 = vmatpush3.bf16.msra.mxu1 %v1705_v11  ;;  %v1707_v13 = vld [vmem:[#allocation7 + $0x50] ss:$12 sps:$4 sm:$0xff]  }
  0xde   : > { %1482 = vmatprep.subr.bf16.mxu1 %v2053_v20  ;;  %v947_v11 = vld [vmem:[#allocation5 + $0x28] sm:$0xff] }
  0xe0   : > { %601 = vmatpush1.bf16.msra.mxu0 %v1700_v14  ;;  %v1708_v14 = vld [vmem:[#allocation7 + $0x68] ss:$12 sps:$4 sm:$0xff]  }
  0xe1   : > { %602 = vmatprep.subr.bf16.mxu0 %v1701_v15  ;;  %1483 = vmatpush3.bf16.msra.mxu1 %v1706_v12  ;;  %v1709_v15 = vld [vmem:[#allocation7 + $0x80] ss:$12 sps:$4 sm:$0xff]  }
  0xe2   : > { %1484 = vmatprep.subr.bf16.mxu1 %v2053_v20 }
  0xe4   : > { %603 = vmatpush1.bf16.msra.mxu0 %v1703_v16  ;;  %v1710_v16 = vld [vmem:[#allocation7 + $0x98] ss:$12 sps:$4 sm:$0xff]  }
  0xe5   : > { %1498 = vmatprep.subr.bf16.mxu0 %v2053_v20  ;;  %1485 = vmatpush3.bf16.msra.mxu1 %v1707_v13 }
  0xe6   : > { %1486 = vmatprep.subr.bf16.mxu1 %v2053_v20 }
  0xe7   : > { %621 = vmatmul.mubr.bf16.vlgmr.msra.gmra.mrb[0].mxu0 %v2376_v19 }
  0xe8   : > { %1514 = vmatprep.mubr.msk.bf16.mxu0 %vm2054_vm0, %v2053_v20 }
  0xe9   : > { %1487 = vmatpush3.bf16.msra.mxu1 %v1708_v14 }
  0xea   : > { %1488 = vmatprep.subr.bf16.mxu1 %v2053_v20 }
  0xed   : > { %1489 = vmatpush3.bf16.msra.mxu1 %v1709_v15 }
  0xee   : > { %1490 = vmatprep.subr.bf16.mxu1 %v2053_v20 }
  0xf1   : > { %1491 = vmatpush3.bf16.msra.mxu1 %v1710_v16 }
  0xf2   : > { %1492 = vmatprep.subr.bf16.mxu1 %v2053_v20 }
 0x1ba   : > { %v622_v24 = vpop.f32.mrb[0].mxu0 }
 0x1bb   : > { %v624_v28 = vpop.f32.mrb[1].mxu0  ;;  %v690_v37 = vadd.f32 %v688_v21, %v622_v24  ;;  %v1711_v21 = vld [vmem:[#allocation7 + $0xb0] ss:$12 sps:$4 sm:$0xff]  }
 0x1bc   : > { %v694_v32 = vadd.f32 %v692_v22, %v624_v28  ;;  %v626_v33 = vpop.f32.mrb[2].mxu0  ;;  %1493 = vmatpush3.bf16.msra.mxu1 %v1711_v21  ;;  %v764_v22 = vld [vmem:[#allocation8 + $0x10] sm:$0xff] }
 0x1bd   : > { %v691_v38 = vadd.f32 %v689_v23, %v626_v33  ;;  %v628_v39 = vpop.f32.mrb[3].mxu0  ;;  %v762_v23 = vld [vmem:[#allocation8] sm:$0xff] }
 0x1be   : > { %v695_v43 = vadd.f32 %v693_v25, %v628_v39  ;;  %v696_v44 = vmul.f32 %v694_v32, %v2385_v26  ;;  %v698_v45 = vmul.f32 %v694_v32, %v2387_v27  ;;  %v700_v46 = vmul.f32 %v694_v32, %v2389_v29 }
 0x1bf   : > { %v720_v50 = vpack.c.bf16 %v691_v38, %v690_v37  ;;  %v702_v51 = vmul.f32 %v694_v32, %v2391_v30  ;;  %v704_v52 = vmul.f32 %v694_v32, %v2393_v31  ;;  %v706_v53 = vmul.f32 %v694_v32, %v2399_v36  ;;  %1495 = vmatmul.mubr.bf16.vlgmr.msra.gmra.mrb[0].mxu1 %v2376_v19  ;;  %v765_v37 = vld [vmem:[#allocation8 + $0x18] sm:$0xff]  ;;  %v763_v38 = vld [vmem:[#allocation8 + $0x8] sm:$0xff] }
 0x1c0   : > { %v697_v54 = vmul.f32 %v695_v43, %v2395_v34  ;;  %v699_v55 = vmul.f32 %v695_v43, %v2397_v35  ;;  %v701_v56 = vmul.f32 %v695_v43, %v2401_v40  ;;  %v703_v57 = vmul.f32 %v695_v43, %v2403_v41  ;;  %v767_v19 = vld [vmem:[#allocation8 + $0x28] sm:$0xff] }
 0x1c1   : > { %v705_v58 = vmul.f32 %v695_v43, %v2405_v42  ;;  %v707_v59 = vmul.f32 %v695_v43, %v2410_v47  ;;  %v708_v60 = vmul.f32 %v694_v32, %v2412_v48  ;;  %v709_v61 = vmul.f32 %v695_v43, %v2414_v49 }
 0x1c2   : > { %v712_v0 = vpack.c.bf16 %v697_v54, %v696_v44  ;;  %v713_v1 = vpack.c.bf16 %v699_v55, %v698_v45  ;;  %v714_v2 = vpack.c.bf16 %v701_v56, %v700_v46  ;;  %v715_v3 = vpack.c.bf16 %v703_v57, %v702_v51  ;;  %v766_v45 = vld [vmem:[#allocation8 + $0x20] sm:$0xff]  ;;  %v769_v51 = vld [vmem:[#allocation8 + $0x38] sm:$0xff]  ;;  %v771_v55 = vld [vmem:[#allocation8 + $0x48] sm:$0xff] }
 0x1c3   : > { %v716_v4 = vpack.c.bf16 %v705_v58, %v704_v52  ;;  %v717_v5 = vpack.c.bf16 %v707_v59, %v706_v53  ;;  %v718_v6 = vpack.c.bf16 %v709_v61, %v708_v60  ;;  %v710_v7 = vmul.f32 %v694_v32, %v2427_v62  ;;  %v768_v52 = vld [vmem:[#allocation8 + $0x30] sm:$0xff]  ;;  %v770_v56 = vld [vmem:[#allocation8 + $0x40] sm:$0xff]  ;;  %v773_v59 = vld [vmem:[#allocation8 + $0x58] sm:$0xff] }
 0x1c4   : > { %1499 = vmatpush3.bf16.xpose.msra.mxu0 %v712_v0  ;;  %v711_v8 = vmul.f32 %v695_v43, %v2429_v63  ;;  %v772_v60 = vld [vmem:[#allocation8 + $0x50] sm:$0xff] }
 0x1c5   : > { %1500 = vmatprep.subr.bf16.mxu0 %v2053_v20 }
 0x1c6   : > { %v719_v9 = vpack.c.bf16 %v711_v8, %v710_v7 }
 0x1cc   : > { %1501 = vmatpush3.bf16.xpose.msra.mxu0 %v713_v1  ;;  %v775_v1 = vld [vmem:[#allocation8 + $0x68] sm:$0xff] }
 0x1cd   : > { %1502 = vmatprep.subr.bf16.mxu0 %v2053_v20 }
 0x1d4   : > { %1503 = vmatpush3.bf16.xpose.msra.mxu0 %v714_v2  ;;  %v774_v2 = vld [vmem:[#allocation8 + $0x60] sm:$0xff] }
 0x1d5   : > { %1504 = vmatprep.subr.bf16.mxu0 %v2053_v20 }
 0x1dc   : > { %1505 = vmatpush3.bf16.xpose.msra.mxu0 %v715_v3 }
 0x1dd   : > { %1506 = vmatprep.subr.bf16.mxu0 %v2053_v20 }
 0x1e4   : > { %1507 = vmatpush3.bf16.xpose.msra.mxu0 %v716_v4 }
 0x1e5   : > { %1508 = vmatprep.subr.bf16.mxu0 %v2053_v20 }
 0x1ec   : > { %1509 = vmatpush3.bf16.xpose.msra.mxu0 %v717_v5  ;;  %v777_v5 = vld [vmem:[#allocation8 + $0x78] sm:$0xff] }
 0x1ed   : > { %1510 = vmatprep.subr.bf16.mxu0 %v2053_v20 }
 0x1f4   : > { %1511 = vmatpush3.bf16.xpose.msra.mxu0 %v718_v6  ;;  %v776_v6 = vld [vmem:[#allocation8 + $0x70] sm:$0xff] }
 0x1f5   : > { %1512 = vmatprep.subr.bf16.mxu0 %v2053_v20 }
 0x1fc   : > { %1513 = vmatpush3.bf16.xpose.msra.mxu0 %v719_v9  ;;  %v946_v9 = vld [vmem:[#allocation5 + $0x10] sm:$0xff] }
 0x203   : > { %1515 = vmatmul.mubr.bf16.vlgmr.msra.gmra.mrb[4].mxu0 %v720_v50 }
 0x292   : > { %v665_v10 = vpop.f32.mrb[0].mxu1 }
 0x293   : > { %v948_v12 = vadd.f32 %v946_v9, %v665_v10  ;;  %v1496_v13 = vpop.f32.mrb[1].mxu1 }
 0x294   : > { %v668_v14 = vpop.f32.mrb[2].mxu1 }
 0x295   : > { %v949_v15 = vadd.f32 %v947_v11, %v668_v14  ;;  %v1497_v16 = vpop.f32.mrb[3].mxu1 }
 0x297   : > { %v950_v21 = vpack.c.bf16 %v949_v15, %v948_v12 }
 0x299   : > { %1518 = vmatprep.subr.bf16.mxu1 %v950_v21 }
 0x29a   : > { %1519 = vmatpush3.bf16.msra.mxu1 %v950_v21 }
 0x29b   : > { %1520 = vmatprep.subr.bf16.mxu1 %v950_v21 }
 0x29e   : > { %1521 = vmatpush3.bf16.msra.mxu1 %v950_v21 }
 0x29f   : > { %1522 = vmatprep.subr.bf16.mxu1 %v950_v21 }
 0x2a2   : > { %1523 = vmatpush3.bf16.msra.mxu1 %v950_v21 }
 0x2a3   : > { %1524 = vmatprep.subr.bf16.mxu1 %v950_v21 }
 0x2a6   : > { %1525 = vmatpush3.bf16.msra.mxu1 %v950_v21 }
 0x2a7   : > { %1526 = vmatprep.subr.bf16.mxu1 %v950_v21 }
 0x2aa   : > { %1527 = vmatpush3.bf16.msra.mxu1 %v950_v21 }
 0x2ab   : > { %1528 = vmatprep.subr.bf16.mxu1 %v950_v21 }
 0x2ae   : > { %1529 = vmatpush3.bf16.msra.mxu1 %v950_v21 }
 0x2af   : > { %1530 = vmatprep.subr.bf16.mxu1 %v950_v21 }
 0x2b2   : > { %1531 = vmatpush3.bf16.msra.mxu1 %v950_v21 }
 0x2b3   : > { %1532 = vmatprep.subr.bf16.mxu1 %v950_v21 }
 0x2b6   : > { %1533 = vmatpush3.bf16.msra.mxu1 %v950_v21 }
 0x2b7   : > { %1550 = vmatprep.subr.bf16.mxu1 %v2053_v20 }
 0x2d6   : > { %v755_v24 = vpop.f32.mrb[4].mxu0 }
 0x2d7   : > { %v1516_v25 = vpop.f32.mrb[5].mxu0  ;;  %v2448_v28 = vadd.f32 %v764_v22, %v755_v24  ;;  %v2450_v32 = vadd.f32 %v762_v23, %v755_v24  ;;  %v2462_v50 = vadd.f32 %v766_v45, %v755_v24  ;;  %v2468_v54 = vadd.f32 %v768_v52, %v755_v24 }
 0x2d8   : > { %v758_v33 = vpop.f32.mrb[6].mxu0  ;;  %v2474_v58 = vadd.f32 %v770_v56, %v755_v24  ;;  %v2480_v0 = vadd.f32 %v772_v60, %v755_v24  ;;  %v2486_v4 = vadd.f32 %v774_v2, %v755_v24  ;;  %v2492_v8 = vadd.f32 %v776_v6, %v755_v24 }
 0x2d9   : > { %798 = vmax.xlane.f32.xlu1 %v2448_v28  ;;  %794 = vmax.xlane.f32.xlu0 %v2450_v32  ;;  %v1517_v39 = vpop.f32.mrb[7].mxu0  ;;  %v2454_v43 = vadd.f32 %v765_v37, %v758_v33  ;;  %v2456_v44 = vadd.f32 %v763_v38, %v758_v33  ;;  %v2460_v46 = vadd.f32 %v767_v19, %v758_v33 }
 0x2da   : > { %v2466_v53 = vadd.f32 %v769_v51, %v758_v33  ;;  %v2472_v57 = vadd.f32 %v771_v55, %v758_v33  ;;  %v2478_v61 = vadd.f32 %v773_v59, %v758_v33  ;;  %v2484_v3 = vadd.f32 %v775_v1, %v758_v33 }
 0x2db   : > { %v2490_v7 = vadd.f32 %v777_v5, %v758_v33 }
 0x2dd   : > { %800 = vmax.xlane.f32.xlu1 %v2454_v43  ;;  %796 = vmax.xlane.f32.xlu0 %v2456_v44 }
 0x2e1   : > { %804 = vmax.xlane.f32.xlu1 %v2460_v46  ;;  %802 = vmax.xlane.f32.xlu0 %v2462_v50 }
 0x2e5   : > { %808 = vmax.xlane.f32.xlu1 %v2466_v53  ;;  %806 = vmax.xlane.f32.xlu0 %v2468_v54 }
 0x2e9   : > { %812 = vmax.xlane.f32.xlu1 %v2472_v57  ;;  %810 = vmax.xlane.f32.xlu0 %v2474_v58 }
 0x2ed   : > { %816 = vmax.xlane.f32.xlu1 %v2478_v61  ;;  %814 = vmax.xlane.f32.xlu0 %v2480_v0 }
 0x2f1   : > { %820 = vmax.xlane.f32.xlu1 %v2484_v3  ;;  %818 = vmax.xlane.f32.xlu0 %v2486_v4 }
 0x2f5   : > { %824 = vmax.xlane.f32.xlu1 %v2490_v7  ;;  %822 = vmax.xlane.f32.xlu0 %v2492_v8 }
 0x366   : > { %v799_v22 = vpop.xlane.xlu1 %798  ;;  %v795_v23 = vpop.xlane.xlu0 %794 }
 0x367   : > { %v828_v24 = vsub.f32 %v2448_v28, %v799_v22  ;;  %v826_v25 = vsub.f32 %v2450_v32, %v795_v23 }
 0x369   : > { %v842_v33 = vmul.f32 1.442695, %v826_v25  ;;  %v846_v39 = vmul.f32 1.442695, %v828_v24 }
 0x36a   : > { %v801_v37 = vpop.xlane.xlu1 %800  ;;  %v797_v38 = vpop.xlane.xlu0 %796 }
 0x36b   : > { %v829_v19 = vsub.f32 %v2454_v43, %v801_v37  ;;  %v827_v45 = vsub.f32 %v2456_v44, %v797_v38  ;;  %1720 = vpow2.f32 %v842_v33 }
 0x36c   : > { %1722 = vpow2.f32 %v846_v39 }
 0x36d   : > { %v844_v51 = vmul.f32 1.442695, %v827_v45  ;;  %v848_v28 = vmul.f32 1.442695, %v829_v19 }
 0x36e   : > { %v805_v52 = vpop.xlane.xlu1 %804  ;;  %v803_v55 = vpop.xlane.xlu0 %802 }
 0x36f   : > { %v831_v32 = vsub.f32 %v2460_v46, %v805_v52  ;;  %v830_v56 = vsub.f32 %v2462_v50, %v803_v55  ;;  %1724 = vpow2.f32 %v844_v51 }
 0x370   : > { %1726 = vpow2.f32 %v848_v28 }
 0x371   : > { %v850_v59 = vmul.f32 1.442695, %v830_v56  ;;  %v852_v43 = vmul.f32 1.442695, %v831_v32 }
 0x372   : > { %v809_v60 = vpop.xlane.xlu1 %808  ;;  %v807_v1 = vpop.xlane.xlu0 %806 }
 0x373   : > { %v833_v44 = vsub.f32 %v2466_v53, %v809_v60  ;;  %v832_v2 = vsub.f32 %v2468_v54, %v807_v1  ;;  %1728 = vpow2.f32 %v850_v59 }
 0x374   : > { %1730 = vpow2.f32 %v852_v43 }
 0x375   : > { %v854_v5 = vmul.f32 1.442695, %v832_v2  ;;  %v2504_v6 = vpop.eup %1720  ;;  %v856_v50 = vmul.f32 1.442695, %v833_v44 }
 0x376   : > { %v813_v46 = vpop.xlane.xlu1 %812  ;;  %v811_v9 = vpop.xlane.xlu0 %810  ;;  %874 = vadd.xlane.f32.xlu0 %v2504_v6 }
 0x377   : > { %v835_v10 = vsub.f32 %v2472_v57, %v813_v46  ;;  %v834_v11 = vsub.f32 %v2474_v58, %v811_v9  ;;  %1732 = vpow2.f32 %v854_v5  ;;  %v2509_v53 = vpop.eup %1722 }
 0x378   : > { %1734 = vpow2.f32 %v856_v50 }
 0x379   : > { %v858_v54 = vmul.f32 1.442695, %v834_v11  ;;  %v2511_v12 = vpop.eup %1724  ;;  %v860_v15 = vmul.f32 1.442695, %v835_v10 }
 0x37a   : > { %v817_v13 = vpop.xlane.xlu1 %816  ;;  %v815_v14 = vpop.xlane.xlu0 %814  ;;  %878 = vadd.xlane.f32.xlu0 %v2509_v53  ;;  %876 = vadd.xlane.f32.xlu1 %v2511_v12 }
 0x37b   : > { %v837_v16 = vsub.f32 %v2478_v61, %v817_v13  ;;  %v836_v57 = vsub.f32 %v2480_v0, %v815_v14  ;;  %1736 = vpow2.f32 %v858_v54  ;;  %v2518_v58 = vpop.eup %1726 }
 0x37c   : > { %1738 = vpow2.f32 %v860_v15 }
 0x37d   : > { %v862_v21 = vmul.f32 1.442695, %v836_v57  ;;  %v2520_v22 = vpop.eup %1728  ;;  %v864_v25 = vmul.f32 1.442695, %v837_v16 }
 0x37e   : > { %v821_v23 = vpop.xlane.xlu1 %820  ;;  %v819_v24 = vpop.xlane.xlu0 %818  ;;  %880 = vadd.xlane.f32.xlu1 %v2518_v58  ;;  %882 = vadd.xlane.f32.xlu0 %v2520_v22 }
 0x37f   : > { %v839_v33 = vsub.f32 %v2484_v3, %v821_v23  ;;  %v838_v61 = vsub.f32 %v2486_v4, %v819_v24  ;;  %1740 = vpow2.f32 %v862_v21  ;;  %v2526_v0 = vpop.eup %1730 }
 0x380   : > { %1742 = vpow2.f32 %v864_v25 }
 0x381   : > { %v866_v37 = vmul.f32 1.442695, %v838_v61  ;;  %v2528_v38 = vpop.eup %1732  ;;  %v868_v45 = vmul.f32 1.442695, %v839_v33 }
 0x382   : > { %v825_v39 = vpop.xlane.xlu1 %824  ;;  %v823_v19 = vpop.xlane.xlu0 %822  ;;  %884 = vadd.xlane.f32.xlu1 %v2526_v0  ;;  %886 = vadd.xlane.f32.xlu0 %v2528_v38 }
 0x383   : > { %v840_v3 = vsub.f32 %v2492_v8, %v823_v19  ;;  %1744 = vpow2.f32 %v866_v37  ;;  %v841_v51 = vsub.f32 %v2490_v7, %v825_v39  ;;  %v2534_v4 = vpop.eup %1734 }
 0x384   : > { %1746 = vpow2.f32 %v868_v45 }
 0x385   : > { %v870_v52 = vmul.f32 1.442695, %v840_v3  ;;  %v2536_v55 = vpop.eup %1736  ;;  %v872_v28 = vmul.f32 1.442695, %v841_v51 }
 0x386   : > { %888 = vadd.xlane.f32.xlu1 %v2534_v4  ;;  %890 = vadd.xlane.f32.xlu0 %v2536_v55  ;;  %v2540_v32 = vpop.eup %1738 }
 0x387   : > { %1748 = vpow2.f32 %v870_v52 }
 0x388   : > { %1750 = vpow2.f32 %v872_v28 }
 0x389   : > { %v2542_v56 = vpop.eup %1740 }
 0x38a   : > { %892 = vadd.xlane.f32.xlu1 %v2540_v32  ;;  %894 = vadd.xlane.f32.xlu0 %v2542_v56  ;;  %v2546_v7 = vpop.eup %1742 }
 0x38d   : > { %v2548_v8 = vpop.eup %1744 }
 0x38e   : > { %896 = vadd.xlane.f32.xlu1 %v2546_v7  ;;  %898 = vadd.xlane.f32.xlu0 %v2548_v8  ;;  %v2552_v59 = vpop.eup %1746 }
 0x391   : > { %v2554_v60 = vpop.eup %1748 }
 0x392   : > { %900 = vadd.xlane.f32.xlu1 %v2552_v59  ;;  %902 = vadd.xlane.f32.xlu0 %v2554_v60  ;;  %v2558_v1 = vpop.eup %1750 }
 0x396   : > { %904 = vadd.xlane.f32.xlu1 %v2558_v1 }
 0x403   : > { %v875_v43 = vpop.xlane.xlu0 %874 }
 0x404   : > { %1752 = vrcp.f32 %v875_v43 }
 0x407   : > { %v877_v44 = vpop.xlane.xlu1 %876  ;;  %v879_v2 = vpop.xlane.xlu0 %878 }
 0x408   : > { %1754 = vrcp.f32 %v877_v44 }
 0x409   : > { %1756 = vrcp.f32 %v879_v2 }
 0x40b   : > { %v881_v5 = vpop.xlane.xlu1 %880  ;;  %v883_v46 = vpop.xlane.xlu0 %882 }
 0x40c   : > { %1758 = vrcp.f32 %v881_v5 }
 0x40d   : > { %1760 = vrcp.f32 %v883_v46 }
 0x40e   : > { %v1753_v10 = vpop.eup %1752 }
 0x40f   : > { %v885_v9 = vpop.xlane.xlu1 %884  ;;  %v887_v50 = vpop.xlane.xlu0 %886  ;;  %v922_v14 = vmul.f32 %v1753_v10, %v2504_v6 }
 0x410   : > { %1762 = vrcp.f32 %v885_v9 }
 0x411   : > { %1764 = vrcp.f32 %v887_v50 }
 0x412   : > { %v1755_v11 = vpop.eup %1754 }
 0x413   : > { %v889_v54 = vpop.xlane.xlu1 %888  ;;  %v891_v13 = vpop.xlane.xlu0 %890  ;;  %v923_v15 = vmul.f32 %v1755_v11, %v2511_v12 }
 0x414   : > { %v1757_v16 = vpop.eup %1756  ;;  %1766 = vrcp.f32 %v889_v54 }
 0x415   : > { %v938_v57 = vpack.c.bf16 %v923_v15, %v922_v14  ;;  %1768 = vrcp.f32 %v891_v13  ;;  %v924_v25 = vmul.f32 %v1757_v16, %v2509_v53 }
 0x416   : > { %v1759_v21 = vpop.eup %1758 }
 0x417   : > { %v893_v23 = vpop.xlane.xlu1 %892  ;;  %1534 = vmatprep.mubr.bf16.mxu1 %v938_v57  ;;  %v895_v24 = vpop.xlane.xlu0 %894  ;;  %v925_v33 = vmul.f32 %v1759_v21, %v2518_v58 }
 0x418   : > { %v1761_v61 = vpop.eup %1760  ;;  %1770 = vrcp.f32 %v893_v23 }
 0x419   : > { %v939_v37 = vpack.c.bf16 %v925_v33, %v924_v25  ;;  %1772 = vrcp.f32 %v895_v24  ;;  %v926_v19 = vmul.f32 %v1761_v61, %v2520_v22  ;;  %v1718_v24 = vld [vmem:[#allocation11 + $0x30] sm:$0xff]   ;;  %v1719_v25 = vld [vmem:[#allocation11 + $0x38] sm:$0xff]  }
 0x41a   : > { %v1763_v39 = vpop.eup %1762 }
 0x41b   : > { %v897_v6 = vpop.xlane.xlu1 %896  ;;  %1535 = vmatmul.mubr.bf16.vlgmr.msra.gmra.mrb[4].mxu1 %v939_v37  ;;  %v899_v12 = vpop.xlane.xlu0 %898  ;;  %v927_v45 = vmul.f32 %v1763_v39, %v2526_v0 }
 0x41c   : > { %v1765_v3 = vpop.eup %1764  ;;  %1774 = vrcp.f32 %v897_v6 }
 0x41d   : > { %v940_v51 = vpack.c.bf16 %v927_v45, %v926_v19  ;;  %1776 = vrcp.f32 %v899_v12  ;;  %v928_v28 = vmul.f32 %v1765_v3, %v2528_v38 }
 0x41e   : > { %v1767_v52 = vpop.eup %1766 }
 0x41f   : > { %v901_v53 = vpop.xlane.xlu1 %900  ;;  %1538 = vmatprep.mubr.bf16.mxu1 %v940_v51  ;;  %v903_v58 = vpop.xlane.xlu0 %902  ;;  %v929_v43 = vmul.f32 %v1767_v52, %v2534_v4 }
 0x420   : > { %v1769_v44 = vpop.eup %1768  ;;  %1778 = vrcp.f32 %v901_v53 }
 0x421   : > { %v941_v2 = vpack.c.bf16 %v929_v43, %v928_v28  ;;  %1780 = vrcp.f32 %v903_v58  ;;  %v930_v0 = vmul.f32 %v1769_v44, %v2536_v55 }
 0x422   : > { %v1771_v5 = vpop.eup %1770 }
 0x423   : > { %v905_v22 = vpop.xlane.xlu1 %904  ;;  %1539 = vmatmul.mubr.bf16.gmra.mrb[8].mxu1 %v941_v2  ;;  %v931_v46 = vmul.f32 %v1771_v5, %v2540_v32  ;;  %v1773_v9 = vpop.eup %1772 }
 0x424   : > { %1782 = vrcp.f32 %v905_v22  ;;  %v932_v38 = vmul.f32 %v1773_v9, %v2542_v56  ;;  %v1712_v56 = vld [vmem:[#allocation11] sm:$0xff]  }
 0x425   : > { %v942_v50 = vpack.c.bf16 %v931_v46, %v930_v0  ;;  %1551 = vmatpush3.bf16.msra.mxu1 %v1712_v56 }
 0x426   : > { %v1775_v10 = vpop.eup %1774  ;;  %1552 = vmatprep.subr.bf16.mxu1 %v2053_v20 }
 0x427   : > { %1542 = vmatprep.mubr.bf16.mxu1 %v942_v50  ;;  %v933_v4 = vmul.f32 %v1775_v10, %v2546_v7  ;;  %v1777_v11 = vpop.eup %1776  ;;  %v1713_v7 = vld [vmem:[#allocation11 + $0x8] sm:$0xff]  }
 0x428   : > { %v934_v14 = vmul.f32 %v1777_v11, %v2548_v8  ;;  %v1714_v8 = vld [vmem:[#allocation11 + $0x10] sm:$0xff]  }
 0x429   : > { %v943_v54 = vpack.c.bf16 %v933_v4, %v932_v38  ;;  %1553 = vmatpush3.bf16.msra.mxu1 %v1713_v7 }
 0x42a   : > { %v1779_v13 = vpop.eup %1778  ;;  %1554 = vmatprep.subr.bf16.mxu1 %v2053_v20 }
 0x42b   : > { %1543 = vmatmul.mubr.bf16.gmra.mrb[12].mxu1 %v943_v54  ;;  %v935_v15 = vmul.f32 %v1779_v13, %v2552_v59  ;;  %v1781_v55 = vpop.eup %1780  ;;  %v1715_v59 = vld [vmem:[#allocation11 + $0x18] sm:$0xff]  }
 0x42c   : > { %v936_v57 = vmul.f32 %v1781_v55, %v2554_v60  ;;  %v1716_v60 = vld [vmem:[#allocation11 + $0x20] sm:$0xff]  }
 0x42d   : > { %v944_v16 = vpack.c.bf16 %v935_v15, %v934_v14  ;;  %1555 = vmatpush3.bf16.msra.mxu1 %v1714_v8 }
 0x42e   : > { %v1783_v32 = vpop.eup %1782  ;;  %1556 = vmatprep.subr.bf16.mxu1 %v2053_v20 }
 0x42f   : > { %1546 = vmatprep.mubr.bf16.mxu1 %v944_v16  ;;  %v937_v21 = vmul.f32 %v1783_v32, %v2558_v1  ;;  %v1717_v1 = vld [vmem:[#allocation11 + $0x28] sm:$0xff]  }
 0x431   : > { %v945_v23 = vpack.c.bf16 %v937_v21, %v936_v57  ;;  %1557 = vmatpush3.bf16.msra.mxu1 %v1715_v59  ;;  %v1417_v57 = vld [vmem:[%s2671_s6] ss:$0 sm:$0xff] }
 0x432   : > { %1558 = vmatprep.subr.bf16.mxu1 %v2053_v20 }
 0x433   : > { %1547 = vmatmul.mubr.bf16.gmra.mrb[16].mxu1 %v945_v23 }
 0x434   : > { %1566 = vmatprep.mubr.msk.bf16.mxu1 %vm2054_vm0, %v2053_v20 }
 0x435   : > { %1559 = vmatpush3.bf16.msra.mxu1 %v1716_v60 }
 0x436   : > { %1560 = vmatprep.subr.bf16.mxu1 %v2053_v20 }
 0x439   : > { %1561 = vmatpush3.bf16.msra.mxu1 %v1717_v1 }
 0x43a   : > { %1562 = vmatprep.subr.bf16.mxu1 %v2053_v20 }
 0x43d   : > { %1563 = vmatpush3.bf16.msra.mxu1 %v1718_v24 }
 0x43e   : > { %1564 = vmatprep.subr.bf16.mxu1 %v2053_v20 }
 0x441   : > { %1565 = vmatpush3.bf16.msra.mxu1 %v1719_v25 }
 0x4ee   : > { %v1536_v33 = vpop.f32.mrb[4].mxu1 }
 0x4ef   : > { %v1050_v61 = vmul.f32 %v1536_v33, %v2387_v27  ;;  %v985_v37 = vpop.f32.mrb[5].mxu1 }
 0x4f0   : > { %v1048_v39 = vmul.f32 %v985_v37, %v2385_v26  ;;  %v1537_v6 = vpop.f32.mrb[6].mxu1 }
 0x4f1   : > { %v1051_v12 = vmul.f32 %v1537_v6, %v2397_v35  ;;  %v988_v19 = vpop.f32.mrb[7].mxu1 }
 0x4f2   : > { %v1064_v45 = vadd.f32 %v1050_v61, %v1048_v39  ;;  %v1049_v3 = vmul.f32 %v988_v19, %v2395_v34 }
 0x4f4   : > { %v1065_v51 = vadd.f32 %v1051_v12, %v1049_v3 }
 0x4f6   : > { %v1540_v52 = vpop.f32.mrb[8].mxu1 }
 0x4f7   : > { %v1001_v53 = vpop.f32.mrb[9].mxu1  ;;  %v1054_v43 = vmul.f32 %v1540_v52, %v2391_v30  ;;  %v1426_v52 = vld [vmem:[%s2672_s7] ss:$0 sm:$0xff] }
 0x4f8   : > { %v1052_v20 = vmul.f32 %v1001_v53, %v2389_v29  ;;  %v1541_v58 = vpop.f32.mrb[10].mxu1 }
 0x4f9   : > { %v1004_v28 = vpop.f32.mrb[11].mxu1  ;;  %v1055_v26 = vmul.f32 %v1541_v58, %v2403_v41 }
 0x4fa   : > { %v1066_v27 = vadd.f32 %v1064_v45, %v1052_v20  ;;  %v1053_v44 = vmul.f32 %v1004_v28, %v2401_v40  ;;  %v1427_v28 = vld [vmem:[%s2673_s8] ss:$0 sm:$0xff] }
 0x4fc   : > { %v1067_v2 = vadd.f32 %v1065_v51, %v1053_v44  ;;  %v1068_v35 = vadd.f32 %v1066_v27, %v1054_v43 }
 0x4fe   : > { %v1544_v5 = vpop.f32.mrb[12].mxu1  ;;  %v1069_v22 = vadd.f32 %v1067_v2, %v1055_v26 }
 0x4ff   : > { %v1017_v0 = vpop.f32.mrb[13].mxu1  ;;  %v1058_v29 = vmul.f32 %v1544_v5, %v2399_v36 }
 0x500   : > { %v1056_v34 = vmul.f32 %v1017_v0, %v2393_v31  ;;  %v1545_v46 = vpop.f32.mrb[14].mxu1 }
 0x501   : > { %v1020_v9 = vpop.f32.mrb[15].mxu1  ;;  %v1059_v30 = vmul.f32 %v1545_v46, %v2410_v47 }
 0x502   : > { %v1070_v50 = vadd.f32 %v1068_v35, %v1056_v34  ;;  %v1057_v10 = vmul.f32 %v1020_v9, %v2405_v42 }
 0x504   : > { %v1071_v38 = vadd.f32 %v1069_v22, %v1057_v10  ;;  %v1072_v40 = vadd.f32 %v1070_v50, %v1058_v29 }
 0x506   : > { %v1548_v4 = vpop.f32.mrb[16].mxu1  ;;  %v1073_v41 = vadd.f32 %v1071_v38, %v1059_v30 }
 0x507   : > { %v1033_v11 = vpop.f32.mrb[17].mxu1  ;;  %v1062_v31 = vmul.f32 %v1548_v4, %v2427_v62 }
 0x508   : > { %v1060_v54 = vmul.f32 %v1033_v11, %v2412_v48  ;;  %v1549_v13 = vpop.f32.mrb[18].mxu1 }
 0x509   : > { %v1036_v14 = vpop.f32.mrb[19].mxu1  ;;  %v1063_v16 = vmul.f32 %v1549_v13, %v2429_v63 }
 0x50a   : > { %v1074_v15 = vadd.f32 %v1072_v40, %v1060_v54  ;;  %v1061_v55 = vmul.f32 %v1036_v14, %v2414_v49 }
 0x50c   : > { %v1076_v36 = vadd.f32 %v1074_v15, %v1062_v31  ;;  %v1075_v42 = vadd.f32 %v1073_v41, %v1061_v55 }
 0x50e   : > { %v1077_v32 = vadd.f32 %v1075_v42, %v1063_v16 }
 0x510   : > { %v1078_v47 = vpack.c.bf16 %v1077_v32, %v1076_v36 }
 0x512   : > { %1567 = vmatmul.mubr.bf16.vlgmr.msra.gmra.mrb[20].mxu1 %v1078_v47 }
 0x5e5   : > { %v1184_v21 = vpop.f32.mrb[20].mxu1 }
 0x5e6   : > { %v1185_v48 = vadd.f32 %v1417_v57, %v1184_v21  ;;  %v1568_v23 = vpop.f32.mrb[21].mxu1 }
 0x5e7   : > { %v1187_v56 = vpop.f32.mrb[22].mxu1 }
 0x5e8   : > { %v1191_v62 = vadd.f32 %v1185_v48, %v2369_v17  ;;  %v1188_v7 = vadd.f32 %v1417_v57, %v1187_v56  ;;  %v1569_v8 = vpop.f32.mrb[23].mxu1 }
 0x5ea   : > { %v1192_v49 = vadd.f32 %v1188_v7, %v2372_v18  ;;  %1193 = vadd.xlane.f32.xlu0 %v1191_v62  ;;  %v1199_v63 = vmul.f32 %v1191_v62, %v1191_v62 }
 0x5ec   : > { %1195 = vadd.xlane.f32.xlu1 %v1192_v49  ;;  %v1200_v59 = vmul.f32 %v1192_v49, %v1192_v49 }
 0x5ee   : > { %1201 = vadd.xlane.f32.xlu0 %v1199_v63 }
 0x5f0   : > { %1203 = vadd.xlane.f32.xlu1 %v1200_v59 }
 0x677   : > { %v1194_v60 = vpop.xlane.xlu0 %1193 }
 0x678   : > { %v1197_v1 = vmul.f32 0.013888889, %v1194_v60 }
 0x679   : > { %v1196_v24 = vpop.xlane.xlu1 %1195 }
 0x67a   : > { %v1198_v25 = vmul.f32 0.013888889, %v1196_v24  ;;  %v1207_v61 = vmul.f32 %v1197_v1, %v1197_v1  ;;  %v1211_v3 = vsub.f32 %v1191_v62, %v1197_v1 }
 0x67b   : > { %v1202_v33 = vpop.xlane.xlu0 %1201 }
 0x67c   : > { %v1205_v37 = vmul.f32 0.013888889, %v1202_v33  ;;  %v1208_v6 = vmul.f32 %v1198_v25, %v1198_v25  ;;  %v1212_v53 = vsub.f32 %v1192_v49, %v1198_v25 }
 0x67d   : > { %v1204_v39 = vpop.xlane.xlu1 %1203 }
 0x67e   : > { %v1209_v17 = vsub.f32 %v1205_v37, %v1207_v61  ;;  %v1206_v12 = vmul.f32 0.013888889, %v1204_v39 }
 0x680   : > { %v1213_v18 = vadd.f32 1e-05, %v1209_v17  ;;  %v1210_v19 = vsub.f32 %v1206_v12, %v1208_v6 }
 0x682   : > { %1784 = vrsqrt.f32 %v1213_v18  ;;  %v1214_v45 = vadd.f32 1e-05, %v1210_v19 }
 0x684   : > { %1786 = vrsqrt.f32 %v1214_v45 }
 0x68c   : > { %v1785_v51 = vpop.eup %1784 }
 0x68d   : > { %v1217_v20 = vmul.f32 %v1785_v51, %v1211_v3 }
 0x68e   : > { %v1787_v58 = vpop.eup %1786 }
 0x68f   : > { %v1226_v43 = vmul.f32 %v1426_v52, %v1217_v20  ;;  %v1218_v27 = vmul.f32 %v1787_v58, %v1212_v53 }
 0x691   : > { %v1235_v44 = vadd.f32 %v1427_v28, %v1226_v43  ;;  %v1227_v26 = vmul.f32 %v1426_v52, %v1218_v27 }
 0x693   : > { %v1236_v2 = vadd.f32 %v1427_v28, %v1227_v26  ;;  %1237 = vst [vmem:[%s423_s23] sm:$0xff] %v1235_v44 }
 0x695   : > { %1238 = vst [vmem:[%s423_s23 + $0x8] sm:$0xff] %v1236_v2 }
 0x696   : > { %1971 = shalt.err (!%p1968_p8)
}
 0x697   : > { %s1972_s19 = scalar_lea.hbm %s2619_s1, 256  ;;  %s1976_s18 = scalar_lea.hbm %s2705_s14, 512 }
 0x698   : > { %p1973_p6 = scmp.ne.s32.totalorder %s2619_s1, %s1972_s19  ;;  %p1977_p3 = scmp.lt.u32.totalorder %s2619_s1, %s2705_s14 }
 0x699   : > { %p1978_p0 = scmp.lt.u32.totalorder %s1976_s18, %s1972_s19  ;;  %p1980_p2 = scmp.lt.u32.totalorder %s1972_s19, %s2619_s1 }
 0x69a   : > { %p1974_p9 = pnand %p1973_p6, %p2706_p7 }
 0x69b   : > { %p1979_p5 = por %p1978_p0, %p1977_p3 }
 0x69c   : > { %p1975_p4 = pneg %p1974_p9 }
 0x69d   : > { %p1981_p10 = por %p1980_p2, %p1979_p5 }
 0x69f   : > { %p1982_p1 = pnand %p1981_p10, %p1975_p4 }
 0x6a1   : > { %1985 = shalt.err (!%p1982_p1)
}
 0x6a2   : > { %s2056_s25 = smov 128   ;;  %s2057_s15 = smov 8  }
 0x6a3   : > { %1592 = dma.vmem_to_hbm [thread:$0]  (%p2706_p7), %s2621_s26, 256, %s2619_s1, %s1240_s16, %s2056_s25, %s2056_s25, %s2057_s15  }
 0x6a4 PF: > { %s1268_s13 = sand.u32 1, %s2024_s30   ;;  %p2707_p11 = scmp.ne.s32.totalorder %s2696_s24, 0 }
 0x6a5   : > { %p2708_p12 = scmp.ge.s32.totalorder %s2036_s12, 2  ;;  %s1269_s17 = scalar_lea.sflag [#allocation4], %s1268_s13 }
 0x6a7   : > { %p1615_p13 = pnand %p2708_p12, %p2707_p11 }
 0x6a9   : > { %2019 = dma.done.wait (!%p1615_p13), %s1269_s17, 256  }
 0x6aa   : > { %2021 = vsyncadd (!%p1615_p13), %s1269_s17, 4294967040  ;;  %p25_p8 = scmp.ge.s32.totalorder %s2268_s3, 4   ;;  %s2709_s30 = smov %s2028_s10 }
 0x6ab   : > { %s2710_s10 = smov %s2032_s11  ;;  %s2711_s11 = smov %s2280_s22 }
 0x6ac   : > { %s2712_s12 = smov %s2268_s3  ;;  %27 = sbr.rel (!%p25_p8) target bundleno = 12 (0xc), region = 121 }
 0x6b3   :  { %1274 = vsyncpa [#allocation3], 1 }
 0x6b4   :  { %1276 = vsyncpa [#allocation3 + $0x1], 1 }
 0x6b5   :  { %1277 = vsyncpa [#allocation6], 1 }
 0x6b6   :  { %1278 = vsyncpa [#allocation9], 1 }
 0x6b7   :  { %1279 = vsyncpa [#allocation12], 1 }
 0x6b8   :  { %1280 = vsyncpa [#allocation4], 1 }
 0x6b9   :  { %1282 = vsyncpa [#allocation4 + $0x1], 1 }

</bundles_post_ra>
